<compile_context>
chip_gen: v5e
topology: v5e:2x2
jax: 0.10.0
libtpu: 0.0.40
codegen_flags: <defaults>
</compile_context>

<pallas_src>
import functools

import jax
import jax.numpy as jnp
from jax.experimental import pallas as pl
from jax.experimental.pallas import tpu as pltpu


# ----------------------------------------------------------------------------
# Fused Pallas kernel: all LSTM layers + final Linear, one invocation.
# ----------------------------------------------------------------------------
def _fused_lstm_fc_kernel(x_ref, *rest, num_layers, hidden_size, seq_len):
    """Fused multi-layer LSTM + fc on the last timestep.

    Ref order (after x_ref):
      [w_ih_0, w_hh_0, b_0, ..., w_ih_{L-1}, w_hh_{L-1}, b_{L-1},
       fc_w, fc_b, out_ref, seq_scratch]

    x_ref       : (B, T, D)      full input sequence, batch_first
    w_ih_l      : (D_in, 4H)
    w_hh_l      : (H, 4H)
    b_l         : (1, 4H)        (b_ih + b_hh)
    fc_w        : (H, C)
    fc_b        : (1, C)
    out_ref     : (B, C)
    seq_scratch : (T*B, H) VMEM  inter-layer hidden sequence, time-major rows.
    """
    H, T, L = hidden_size, seq_len, num_layers
    layer_refs = [(rest[3 * l], rest[3 * l + 1], rest[3 * l + 2])
                  for l in range(L)]
    fc_w_ref, fc_b_ref, out_ref, seq_ref = rest[3 * L:]

    B = x_ref.shape[0]
    D = x_ref.shape[2]

    h = None
    for l, (wih_ref, whh_ref, b_ref) in enumerate(layer_refs):
        last_layer = (l == L - 1)

        # ---- Hoisted, time-parallel input projection: one MXU matmul for
        #      the whole sequence instead of T tiny per-step dots.
        if l == 0:
            # Rows are batch-major (b*T + t); reshape back to (B, T, 4H) so
            # per-timestep slices are simple static middle-dim slices.
            x2d = x_ref[...].reshape(B * T, D)
            proj = (jnp.dot(x2d, wih_ref[...],
                            preferred_element_type=jnp.float32)
                    + b_ref[...])
            proj = proj.reshape(B, T, 4 * H)
            xp = [proj[:, t, :] for t in range(T)]           # static slices
        else:
            # Scratch holds the previous layer's h_t time-major (t*B + b), so
            # the projection is a contiguous 2-D dot and each per-timestep
            # slice is a contiguous row range.
            seq = seq_ref[...]                                # (T*B, H)
            proj = (jnp.dot(seq, wih_ref[...],
                            preferred_element_type=jnp.float32)
                    + b_ref[...])                             # (T*B, 4H)
            xp = [proj[t * B:(t + 1) * B, :] for t in range(T)]

        w_hh = whh_ref[...]
        h = jnp.zeros((B, H), jnp.float32)
        c = jnp.zeros((B, H), jnp.float32)

        # ---- Serial recurrence (fully unrolled): only h @ W_hh + gate math
        #      remain on the per-timestep critical path.
        for t in range(T):
            gates = xp[t] + jnp.dot(h, w_hh,
                                    preferred_element_type=jnp.float32)
            # One full-width sigmoid pass covers i, f, o; tanh only on the
            # g-gate slice (and later on c) to cut EUP work.
            sig = jax.nn.sigmoid(gates)
            i_g = sig[:, 0 * H:1 * H]
            f_g = sig[:, 1 * H:2 * H]
            o_g = sig[:, 3 * H:4 * H]
            g_g = jnp.tanh(gates[:, 2 * H:3 * H])

            c = f_g * c + i_g * g_g
            h = o_g * jnp.tanh(c)

            if not last_layer:
                # Time-major store: next layer's hoisted projection reads a
                # contiguous (T*B, H) slab with no relayout.
                seq_ref[t * B:(t + 1) * B, :] = h

    # ---- Fused final Linear on the last timestep's hidden state only.
    out_ref[...] = (jnp.dot(h, fc_w_ref[...],
                            preferred_element_type=jnp.float32)
                    + fc_b_ref[...])


# ----------------------------------------------------------------------------
# Wrapper
# ----------------------------------------------------------------------------
def lstm_model_forward(x_btd, params):
    """Full forward pass matching LSTMModel.forward.

    x_btd : (B, T, D) batch-first input (PyTorch convention).
    params: dict with per-layer LSTM weights and fc weights.
    returns (B, num_classes).
    """
    B, T, D = x_btd.shape
    H = params["lstm"][0]["w_hh"].shape[0]
    C = params["fc_w"].shape[1]
    L = len(params["lstm"])

    inputs = [x_btd]
    in_specs = [pl.BlockSpec((B, T, D), lambda i: (0, 0, 0))]
    for layer in params["lstm"]:
        w_ih, w_hh, bias = layer["w_ih"], layer["w_hh"], layer["bias"]
        inputs += [w_ih, w_hh, bias]
        in_specs += [
            pl.BlockSpec(w_ih.shape, lambda i: (0, 0)),
            pl.BlockSpec(w_hh.shape, lambda i: (0, 0)),
            pl.BlockSpec(bias.shape, lambda i: (0, 0)),
        ]
    inputs += [params["fc_w"], params["fc_b"]]
    in_specs += [
        pl.BlockSpec(params["fc_w"].shape, lambda i: (0, 0)),
        pl.BlockSpec(params["fc_b"].shape, lambda i: (0, 0)),
    ]

    kernel = functools.partial(
        _fused_lstm_fc_kernel, num_layers=L, hidden_size=H, seq_len=T)

    return pl.pallas_call(
        kernel,
        out_shape=jax.ShapeDtypeStruct((B, C), jnp.float32),
        grid_spec=pltpu.PrefetchScalarGridSpec(
            num_scalar_prefetch=0,
            grid=(1,),                       # whole problem in one invocation
            in_specs=in_specs,
            out_specs=pl.BlockSpec((B, C), lambda i: (0, 0)),
            scratch_shapes=[
                pltpu.VMEM((T * B, H), jnp.float32),   # inter-layer sequence
            ],
        ),
        compiler_params=pltpu.CompilerParams(
            dimension_semantics=("arbitrary",)),       # recurrence is serial
    )(*inputs)


# ----------------------------------------------------------------------------
# Pure-JAX reference (for correctness check)
# ----------------------------------------------------------------------------
def lstm_model_reference(x_btd, params):
    H = params["lstm"][0]["w_hh"].shape[0]
    seq = jnp.transpose(x_btd, (1, 0, 2))             # (T, B, D)
    for layer in params["lstm"]:
        w_ih, w_hh, bias = layer["w_ih"], layer["w_hh"], layer["bias"]
        B = seq.shape[1]

        def step(carry, x_t):
            h, c = carry
            gates = x_t @ w_ih + h @ w_hh + bias
            i = jax.nn.sigmoid(gates[:, 0 * H:1 * H])
            f = jax.nn.sigmoid(gates[:, 1 * H:2 * H])
            g = jnp.tanh(gates[:, 2 * H:3 * H])
            o = jax.nn.sigmoid(gates[:, 3 * H:4 * H])
            c = f * c + i * g
            h = o * jnp.tanh(c)
            return (h, c), h

        init = (jnp.zeros((B, H), jnp.float32), jnp.zeros((B, H), jnp.float32))
        _, seq = jax.lax.scan(step, init, seq)
    h_last = seq[-1]
    return h_last @ params["fc_w"] + params["fc_b"]


# ----------------------------------------------------------------------------
# Deterministic parameter init (shapes follow nn.LSTM / nn.Linear)
# ----------------------------------------------------------------------------
def init_params(key, input_size, hidden_size, num_layers, num_classes):
    params = {"lstm": []}
    bound = 1.0 / jnp.sqrt(hidden_size)
    for l in range(num_layers):
        d_in = input_size if l == 0 else hidden_size
        key, k1, k2, k3, k4 = jax.random.split(key, 5)
        # stored pre-transposed: (D_in, 4H) and (H, 4H); gate order [i|f|g|o]
        w_ih = jax.random.uniform(k1, (d_in, 4 * hidden_size), jnp.float32,
                                  -bound, bound)
        w_hh = jax.random.uniform(k2, (hidden_size, 4 * hidden_size),
                                  jnp.float32, -bound, bound)
        b_ih = jax.random.uniform(k3, (4 * hidden_size,), jnp.float32,
                                  -bound, bound)
        b_hh = jax.random.uniform(k4, (4 * hidden_size,), jnp.float32,
                                  -bound, bound)
        params["lstm"].append(
            {"w_ih": w_ih, "w_hh": w_hh, "bias": (b_ih + b_hh)[None, :]})
    key, k5, k6 = jax.random.split(key, 3)
    fc_bound = 1.0 / jnp.sqrt(hidden_size)
    params["fc_w"] = jax.random.uniform(k5, (hidden_size, num_classes),
                                        jnp.float32, -fc_bound, fc_bound)
    params["fc_b"] = jax.random.uniform(k6, (1, num_classes), jnp.float32,
                                        -fc_bound, fc_bound)
    return params


# ----------------------------------------------------------------------------
if __name__ == "__main__":
    INPUT_SIZE = 16
    HIDDEN_SIZE = 32
    NUM_LAYERS = 2
    NUM_CLASSES = 5
    BATCH = 2
    SEQ = 8

    key = jax.random.PRNGKey(0)
    key, xk = jax.random.split(key)
    x = jax.random.normal(xk, (BATCH, SEQ, INPUT_SIZE), jnp.float32)
    params = init_params(key, INPUT_SIZE, HIDDEN_SIZE, NUM_LAYERS, NUM_CLASSES)

    out = lstm_model_forward(x, params)
    out = jax.block_until_ready(out)
    assert out.shape == (BATCH, NUM_CLASSES)

    ref = jax.block_until_ready(lstm_model_reference(x, params))
    assert jnp.allclose(out, ref, rtol=1e-4, atol=1e-4), "mismatch vs reference"

    print("KERNEL_OK")
</pallas_src>

<mosaic_0001>
module attributes {stable_mosaic.version = 11 : i64} {
  func.func @_fused_lstm_fc_kernel(%arg0: i32, %arg1: memref<2x8x16xf32, #tpu.memory_space<vmem>>, %arg2: memref<16x128xf32, #tpu.memory_space<vmem>>, %arg3: memref<32x128xf32, #tpu.memory_space<vmem>>, %arg4: memref<1x128xf32, #tpu.memory_space<vmem>>, %arg5: memref<32x128xf32, #tpu.memory_space<vmem>>, %arg6: memref<32x128xf32, #tpu.memory_space<vmem>>, %arg7: memref<1x128xf32, #tpu.memory_space<vmem>>, %arg8: memref<32x5xf32, #tpu.memory_space<vmem>>, %arg9: memref<1x5xf32, #tpu.memory_space<vmem>>, %arg10: memref<2x5xf32, #tpu.memory_space<vmem>>, %arg11: memref<16x32xf32, #tpu.memory_space<vmem>>) attributes {dimension_semantics = [#tpu.dimension_semantics<arbitrary>], iteration_bounds = array<i64: 1>, scalar_prefetch = 0 : i64, scratch_operands = 1 : i64, tpu.core_type = #tpu.core_type<tc>, window_params = [{pipeline_mode = #tpu.pipeline_mode<synchronous>, transform_indices = @transform_0, window_bounds = array<i64: 2, 8, 16>}, {pipeline_mode = #tpu.pipeline_mode<synchronous>, transform_indices = @transform_1, window_bounds = array<i64: 16, 128>}, {pipeline_mode = #tpu.pipeline_mode<synchronous>, transform_indices = @transform_2, window_bounds = array<i64: 32, 128>}, {pipeline_mode = #tpu.pipeline_mode<synchronous>, transform_indices = @transform_3, window_bounds = array<i64: 1, 128>}, {pipeline_mode = #tpu.pipeline_mode<synchronous>, transform_indices = @transform_4, window_bounds = array<i64: 32, 128>}, {pipeline_mode = #tpu.pipeline_mode<synchronous>, transform_indices = @transform_5, window_bounds = array<i64: 32, 128>}, {pipeline_mode = #tpu.pipeline_mode<synchronous>, transform_indices = @transform_6, window_bounds = array<i64: 1, 128>}, {pipeline_mode = #tpu.pipeline_mode<synchronous>, transform_indices = @transform_7, window_bounds = array<i64: 32, 5>}, {pipeline_mode = #tpu.pipeline_mode<synchronous>, transform_indices = @transform_8, window_bounds = array<i64: 1, 5>}, {pipeline_mode = #tpu.pipeline_mode<synchronous>, transform_indices = @transform_9, window_bounds = array<i64: 2, 5>}]} {
    %c0 = arith.constant 0 : index
    %c0_0 = arith.constant 0 : index
    %c0_1 = arith.constant 0 : index
    %0 = vector.load %arg1[%c0, %c0_0, %c0_1] : memref<2x8x16xf32, #tpu.memory_space<vmem>>, vector<2x8x16xf32>
    %1 = vector.shape_cast %0 : vector<2x8x16xf32> to vector<16x16xf32>
    %c0_2 = arith.constant 0 : index
    %c0_3 = arith.constant 0 : index
    %2 = vector.load %arg2[%c0_2, %c0_3] : memref<16x128xf32, #tpu.memory_space<vmem>>, vector<16x128xf32>
    %cst = arith.constant dense<0.000000e+00> : vector<16x128xf32>
    %3 = tpu.matmul %1, %2, %cst {dimension_numbers = #tpu.dot_dimension_numbers<[1], [0], [0], [1], [0, 0, 1, 1], [], []>} : vector<16x16xf32>, vector<16x128xf32>, vector<16x128xf32> -> vector<16x128xf32>
    %c0_4 = arith.constant 0 : index
    %c0_5 = arith.constant 0 : index
    %4 = vector.load %arg4[%c0_4, %c0_5] : memref<1x128xf32, #tpu.memory_space<vmem>>, vector<1x128xf32>
    %5 = vector.broadcast %4 : vector<1x128xf32> to vector<16x128xf32>
    %6 = arith.addf %3, %5 : vector<16x128xf32>
    %7 = vector.shape_cast %6 : vector<16x128xf32> to vector<2x8x128xf32>
    %8 = vector.extract_strided_slice %7 {offsets = [0, 0, 0], sizes = [2, 1, 128], strides = [1, 1, 1]} : vector<2x8x128xf32> to vector<2x1x128xf32>
    %9 = vector.shape_cast %8 : vector<2x1x128xf32> to vector<2x128xf32>
    %10 = vector.extract_strided_slice %7 {offsets = [0, 1, 0], sizes = [2, 1, 128], strides = [1, 1, 1]} : vector<2x8x128xf32> to vector<2x1x128xf32>
    %11 = vector.shape_cast %10 : vector<2x1x128xf32> to vector<2x128xf32>
    %12 = vector.extract_strided_slice %7 {offsets = [0, 2, 0], sizes = [2, 1, 128], strides = [1, 1, 1]} : vector<2x8x128xf32> to vector<2x1x128xf32>
    %13 = vector.shape_cast %12 : vector<2x1x128xf32> to vector<2x128xf32>
    %14 = vector.extract_strided_slice %7 {offsets = [0, 3, 0], sizes = [2, 1, 128], strides = [1, 1, 1]} : vector<2x8x128xf32> to vector<2x1x128xf32>
    %15 = vector.shape_cast %14 : vector<2x1x128xf32> to vector<2x128xf32>
    %16 = vector.extract_strided_slice %7 {offsets = [0, 4, 0], sizes = [2, 1, 128], strides = [1, 1, 1]} : vector<2x8x128xf32> to vector<2x1x128xf32>
    %17 = vector.shape_cast %16 : vector<2x1x128xf32> to vector<2x128xf32>
    %18 = vector.extract_strided_slice %7 {offsets = [0, 5, 0], sizes = [2, 1, 128], strides = [1, 1, 1]} : vector<2x8x128xf32> to vector<2x1x128xf32>
    %19 = vector.shape_cast %18 : vector<2x1x128xf32> to vector<2x128xf32>
    %20 = vector.extract_strided_slice %7 {offsets = [0, 6, 0], sizes = [2, 1, 128], strides = [1, 1, 1]} : vector<2x8x128xf32> to vector<2x1x128xf32>
    %21 = vector.shape_cast %20 : vector<2x1x128xf32> to vector<2x128xf32>
    %22 = vector.extract_strided_slice %7 {offsets = [0, 7, 0], sizes = [2, 1, 128], strides = [1, 1, 1]} : vector<2x8x128xf32> to vector<2x1x128xf32>
    %23 = vector.shape_cast %22 : vector<2x1x128xf32> to vector<2x128xf32>
    %c0_6 = arith.constant 0 : index
    %c0_7 = arith.constant 0 : index
    %24 = vector.load %arg3[%c0_6, %c0_7] : memref<32x128xf32, #tpu.memory_space<vmem>>, vector<32x128xf32>
    %cst_8 = arith.constant 0.000000e+00 : f32
    %25 = vector.broadcast %cst_8 : f32 to vector<2x32xf32>
    %cst_9 = arith.constant 0.000000e+00 : f32
    %26 = vector.broadcast %cst_9 : f32 to vector<2x32xf32>
    %cst_10 = arith.constant dense<0.000000e+00> : vector<2x128xf32>
    %27 = tpu.matmul %25, %24, %cst_10 {dimension_numbers = #tpu.dot_dimension_numbers<[1], [0], [0], [1], [0, 0, 1, 1], [], []>} : vector<2x32xf32>, vector<32x128xf32>, vector<2x128xf32> -> vector<2x128xf32>
    %28 = arith.addf %9, %27 : vector<2x128xf32>
    %29 = arith.negf %28 : vector<2x128xf32>
    %30 = math.exp %29 : vector<2x128xf32>
    %cst_11 = arith.constant 1.000000e+00 : f32
    %31 = vector.broadcast %cst_11 : f32 to vector<2x128xf32>
    %32 = arith.addf %31, %30 : vector<2x128xf32>
    %33 = arith.divf %31, %32 : vector<2x128xf32>
    %34 = vector.extract_strided_slice %33 {offsets = [0, 0], sizes = [2, 32], strides = [1, 1]} : vector<2x128xf32> to vector<2x32xf32>
    %35 = vector.extract_strided_slice %33 {offsets = [0, 32], sizes = [2, 32], strides = [1, 1]} : vector<2x128xf32> to vector<2x32xf32>
    %36 = vector.extract_strided_slice %33 {offsets = [0, 96], sizes = [2, 32], strides = [1, 1]} : vector<2x128xf32> to vector<2x32xf32>
    %37 = vector.extract_strided_slice %28 {offsets = [0, 64], sizes = [2, 32], strides = [1, 1]} : vector<2x128xf32> to vector<2x32xf32>
    %38 = math.tanh %37 : vector<2x32xf32>
    %39 = arith.mulf %35, %26 : vector<2x32xf32>
    %40 = arith.mulf %34, %38 : vector<2x32xf32>
    %41 = arith.addf %39, %40 : vector<2x32xf32>
    %42 = math.tanh %41 : vector<2x32xf32>
    %43 = arith.mulf %36, %42 : vector<2x32xf32>
    %c0_12 = arith.constant 0 : index
    %c0_13 = arith.constant 0 : index
    %44 = vector.load %arg11[%c0_12, %c0_13] : memref<16x32xf32, #tpu.memory_space<vmem>>, vector<2x32xf32>
    tpu.vector_store %arg11[%c0_12, %c0_13], %43 {strides = array<i32>} : memref<16x32xf32, #tpu.memory_space<vmem>>, vector<2x32xf32>,
    %cst_14 = arith.constant dense<0.000000e+00> : vector<2x128xf32>
    %45 = tpu.matmul %43, %24, %cst_14 {dimension_numbers = #tpu.dot_dimension_numbers<[1], [0], [0], [1], [0, 0, 1, 1], [], []>} : vector<2x32xf32>, vector<32x128xf32>, vector<2x128xf32> -> vector<2x128xf32>
    %46 = arith.addf %11, %45 : vector<2x128xf32>
    %47 = arith.negf %46 : vector<2x128xf32>
    %48 = math.exp %47 : vector<2x128xf32>
    %cst_15 = arith.constant 1.000000e+00 : f32
    %49 = vector.broadcast %cst_15 : f32 to vector<2x128xf32>
    %50 = arith.addf %49, %48 : vector<2x128xf32>
    %51 = arith.divf %49, %50 : vector<2x128xf32>
    %52 = vector.extract_strided_slice %51 {offsets = [0, 0], sizes = [2, 32], strides = [1, 1]} : vector<2x128xf32> to vector<2x32xf32>
    %53 = vector.extract_strided_slice %51 {offsets = [0, 32], sizes = [2, 32], strides = [1, 1]} : vector<2x128xf32> to vector<2x32xf32>
    %54 = vector.extract_strided_slice %51 {offsets = [0, 96], sizes = [2, 32], strides = [1, 1]} : vector<2x128xf32> to vector<2x32xf32>
    %55 = vector.extract_strided_slice %46 {offsets = [0, 64], sizes = [2, 32], strides = [1, 1]} : vector<2x128xf32> to vector<2x32xf32>
    %56 = math.tanh %55 : vector<2x32xf32>
    %57 = arith.mulf %53, %41 : vector<2x32xf32>
    %58 = arith.mulf %52, %56 : vector<2x32xf32>
    %59 = arith.addf %57, %58 : vector<2x32xf32>
    %60 = math.tanh %59 : vector<2x32xf32>
    %61 = arith.mulf %54, %60 : vector<2x32xf32>
    %c2 = arith.constant 2 : index
    %c0_16 = arith.constant 0 : index
    %62 = vector.load %arg11[%c2, %c0_16] : memref<16x32xf32, #tpu.memory_space<vmem>>, vector<2x32xf32>
    tpu.vector_store %arg11[%c2, %c0_16], %61 {strides = array<i32>} : memref<16x32xf32, #tpu.memory_space<vmem>>, vector<2x32xf32>,
    %cst_17 = arith.constant dense<0.000000e+00> : vector<2x128xf32>
    %63 = tpu.matmul %61, %24, %cst_17 {dimension_numbers = #tpu.dot_dimension_numbers<[1], [0], [0], [1], [0, 0, 1, 1], [], []>} : vector<2x32xf32>, vector<32x128xf32>, vector<2x128xf32> -> vector<2x128xf32>
    %64 = arith.addf %13, %63 : vector<2x128xf32>
    %65 = arith.negf %64 : vector<2x128xf32>
    %66 = math.exp %65 : vector<2x128xf32>
    %cst_18 = arith.constant 1.000000e+00 : f32
    %67 = vector.broadcast %cst_18 : f32 to vector<2x128xf32>
    %68 = arith.addf %67, %66 : vector<2x128xf32>
    %69 = arith.divf %67, %68 : vector<2x128xf32>
    %70 = vector.extract_strided_slice %69 {offsets = [0, 0], sizes = [2, 32], strides = [1, 1]} : vector<2x128xf32> to vector<2x32xf32>
    %71 = vector.extract_strided_slice %69 {offsets = [0, 32], sizes = [2, 32], strides = [1, 1]} : vector<2x128xf32> to vector<2x32xf32>
    %72 = vector.extract_strided_slice %69 {offsets = [0, 96], sizes = [2, 32], strides = [1, 1]} : vector<2x128xf32> to vector<2x32xf32>
    %73 = vector.extract_strided_slice %64 {offsets = [0, 64], sizes = [2, 32], strides = [1, 1]} : vector<2x128xf32> to vector<2x32xf32>
    %74 = math.tanh %73 : vector<2x32xf32>
    %75 = arith.mulf %71, %59 : vector<2x32xf32>
    %76 = arith.mulf %70, %74 : vector<2x32xf32>
    %77 = arith.addf %75, %76 : vector<2x32xf32>
    %78 = math.tanh %77 : vector<2x32xf32>
    %79 = arith.mulf %72, %78 : vector<2x32xf32>
    %c4 = arith.constant 4 : index
    %c0_19 = arith.constant 0 : index
    %80 = vector.load %arg11[%c4, %c0_19] : memref<16x32xf32, #tpu.memory_space<vmem>>, vector<2x32xf32>
    tpu.vector_store %arg11[%c4, %c0_19], %79 {strides = array<i32>} : memref<16x32xf32, #tpu.memory_space<vmem>>, vector<2x32xf32>,
    %cst_20 = arith.constant dense<0.000000e+00> : vector<2x128xf32>
    %81 = tpu.matmul %79, %24, %cst_20 {dimension_numbers = #tpu.dot_dimension_numbers<[1], [0], [0], [1], [0, 0, 1, 1], [], []>} : vector<2x32xf32>, vector<32x128xf32>, vector<2x128xf32> -> vector<2x128xf32>
    %82 = arith.addf %15, %81 : vector<2x128xf32>
    %83 = arith.negf %82 : vector<2x128xf32>
    %84 = math.exp %83 : vector<2x128xf32>
    %cst_21 = arith.constant 1.000000e+00 : f32
    %85 = vector.broadcast %cst_21 : f32 to vector<2x128xf32>
    %86 = arith.addf %85, %84 : vector<2x128xf32>
    %87 = arith.divf %85, %86 : vector<2x128xf32>
    %88 = vector.extract_strided_slice %87 {offsets = [0, 0], sizes = [2, 32], strides = [1, 1]} : vector<2x128xf32> to vector<2x32xf32>
    %89 = vector.extract_strided_slice %87 {offsets = [0, 32], sizes = [2, 32], strides = [1, 1]} : vector<2x128xf32> to vector<2x32xf32>
    %90 = vector.extract_strided_slice %87 {offsets = [0, 96], sizes = [2, 32], strides = [1, 1]} : vector<2x128xf32> to vector<2x32xf32>
    %91 = vector.extract_strided_slice %82 {offsets = [0, 64], sizes = [2, 32], strides = [1, 1]} : vector<2x128xf32> to vector<2x32xf32>
    %92 = math.tanh %91 : vector<2x32xf32>
    %93 = arith.mulf %89, %77 : vector<2x32xf32>
    %94 = arith.mulf %88, %92 : vector<2x32xf32>
    %95 = arith.addf %93, %94 : vector<2x32xf32>
    %96 = math.tanh %95 : vector<2x32xf32>
    %97 = arith.mulf %90, %96 : vector<2x32xf32>
    %c6 = arith.constant 6 : index
    %c0_22 = arith.constant 0 : index
    %98 = vector.load %arg11[%c6, %c0_22] : memref<16x32xf32, #tpu.memory_space<vmem>>, vector<2x32xf32>
    tpu.vector_store %arg11[%c6, %c0_22], %97 {strides = array<i32>} : memref<16x32xf32, #tpu.memory_space<vmem>>, vector<2x32xf32>,
    %cst_23 = arith.constant dense<0.000000e+00> : vector<2x128xf32>
    %99 = tpu.matmul %97, %24, %cst_23 {dimension_numbers = #tpu.dot_dimension_numbers<[1], [0], [0], [1], [0, 0, 1, 1], [], []>} : vector<2x32xf32>, vector<32x128xf32>, vector<2x128xf32> -> vector<2x128xf32>
    %100 = arith.addf %17, %99 : vector<2x128xf32>
    %101 = arith.negf %100 : vector<2x128xf32>
    %102 = math.exp %101 : vector<2x128xf32>
    %cst_24 = arith.constant 1.000000e+00 : f32
    %103 = vector.broadcast %cst_24 : f32 to vector<2x128xf32>
    %104 = arith.addf %103, %102 : vector<2x128xf32>
    %105 = arith.divf %103, %104 : vector<2x128xf32>
    %106 = vector.extract_strided_slice %105 {offsets = [0, 0], sizes = [2, 32], strides = [1, 1]} : vector<2x128xf32> to vector<2x32xf32>
    %107 = vector.extract_strided_slice %105 {offsets = [0, 32], sizes = [2, 32], strides = [1, 1]} : vector<2x128xf32> to vector<2x32xf32>
    %108 = vector.extract_strided_slice %105 {offsets = [0, 96], sizes = [2, 32], strides = [1, 1]} : vector<2x128xf32> to vector<2x32xf32>
    %109 = vector.extract_strided_slice %100 {offsets = [0, 64], sizes = [2, 32], strides = [1, 1]} : vector<2x128xf32> to vector<2x32xf32>
    %110 = math.tanh %109 : vector<2x32xf32>
    %111 = arith.mulf %107, %95 : vector<2x32xf32>
    %112 = arith.mulf %106, %110 : vector<2x32xf32>
    %113 = arith.addf %111, %112 : vector<2x32xf32>
    %114 = math.tanh %113 : vector<2x32xf32>
    %115 = arith.mulf %108, %114 : vector<2x32xf32>
    %c8 = arith.constant 8 : index
    %c0_25 = arith.constant 0 : index
    %116 = vector.load %arg11[%c8, %c0_25] : memref<16x32xf32, #tpu.memory_space<vmem>>, vector<2x32xf32>
    tpu.vector_store %arg11[%c8, %c0_25], %115 {strides = array<i32>} : memref<16x32xf32, #tpu.memory_space<vmem>>, vector<2x32xf32>,
    %cst_26 = arith.constant dense<0.000000e+00> : vector<2x128xf32>
    %117 = tpu.matmul %115, %24, %cst_26 {dimension_numbers = #tpu.dot_dimension_numbers<[1], [0], [0], [1], [0, 0, 1, 1], [], []>} : vector<2x32xf32>, vector<32x128xf32>, vector<2x128xf32> -> vector<2x128xf32>
    %118 = arith.addf %19, %117 : vector<2x128xf32>
    %119 = arith.negf %118 : vector<2x128xf32>
    %120 = math.exp %119 : vector<2x128xf32>
    %cst_27 = arith.constant 1.000000e+00 : f32
    %121 = vector.broadcast %cst_27 : f32 to vector<2x128xf32>
    %122 = arith.addf %121, %120 : vector<2x128xf32>
    %123 = arith.divf %121, %122 : vector<2x128xf32>
    %124 = vector.extract_strided_slice %123 {offsets = [0, 0], sizes = [2, 32], strides = [1, 1]} : vector<2x128xf32> to vector<2x32xf32>
    %125 = vector.extract_strided_slice %123 {offsets = [0, 32], sizes = [2, 32], strides = [1, 1]} : vector<2x128xf32> to vector<2x32xf32>
    %126 = vector.extract_strided_slice %123 {offsets = [0, 96], sizes = [2, 32], strides = [1, 1]} : vector<2x128xf32> to vector<2x32xf32>
    %127 = vector.extract_strided_slice %118 {offsets = [0, 64], sizes = [2, 32], strides = [1, 1]} : vector<2x128xf32> to vector<2x32xf32>
    %128 = math.tanh %127 : vector<2x32xf32>
    %129 = arith.mulf %125, %113 : vector<2x32xf32>
    %130 = arith.mulf %124, %128 : vector<2x32xf32>
    %131 = arith.addf %129, %130 : vector<2x32xf32>
    %132 = math.tanh %131 : vector<2x32xf32>
    %133 = arith.mulf %126, %132 : vector<2x32xf32>
    %c10 = arith.constant 10 : index
    %c0_28 = arith.constant 0 : index
    %134 = vector.load %arg11[%c10, %c0_28] : memref<16x32xf32, #tpu.memory_space<vmem>>, vector<2x32xf32>
    tpu.vector_store %arg11[%c10, %c0_28], %133 {strides = array<i32>} : memref<16x32xf32, #tpu.memory_space<vmem>>, vector<2x32xf32>,
    %cst_29 = arith.constant dense<0.000000e+00> : vector<2x128xf32>
    %135 = tpu.matmul %133, %24, %cst_29 {dimension_numbers = #tpu.dot_dimension_numbers<[1], [0], [0], [1], [0, 0, 1, 1], [], []>} : vector<2x32xf32>, vector<32x128xf32>, vector<2x128xf32> -> vector<2x128xf32>
    %136 = arith.addf %21, %135 : vector<2x128xf32>
    %137 = arith.negf %136 : vector<2x128xf32>
    %138 = math.exp %137 : vector<2x128xf32>
    %cst_30 = arith.constant 1.000000e+00 : f32
    %139 = vector.broadcast %cst_30 : f32 to vector<2x128xf32>
    %140 = arith.addf %139, %138 : vector<2x128xf32>
    %141 = arith.divf %139, %140 : vector<2x128xf32>
    %142 = vector.extract_strided_slice %141 {offsets = [0, 0], sizes = [2, 32], strides = [1, 1]} : vector<2x128xf32> to vector<2x32xf32>
    %143 = vector.extract_strided_slice %141 {offsets = [0, 32], sizes = [2, 32], strides = [1, 1]} : vector<2x128xf32> to vector<2x32xf32>
    %144 = vector.extract_strided_slice %141 {offsets = [0, 96], sizes = [2, 32], strides = [1, 1]} : vector<2x128xf32> to vector<2x32xf32>
    %145 = vector.extract_strided_slice %136 {offsets = [0, 64], sizes = [2, 32], strides = [1, 1]} : vector<2x128xf32> to vector<2x32xf32>
    %146 = math.tanh %145 : vector<2x32xf32>
    %147 = arith.mulf %143, %131 : vector<2x32xf32>
    %148 = arith.mulf %142, %146 : vector<2x32xf32>
    %149 = arith.addf %147, %148 : vector<2x32xf32>
    %150 = math.tanh %149 : vector<2x32xf32>
    %151 = arith.mulf %144, %150 : vector<2x32xf32>
    %c12 = arith.constant 12 : index
    %c0_31 = arith.constant 0 : index
    %152 = vector.load %arg11[%c12, %c0_31] : memref<16x32xf32, #tpu.memory_space<vmem>>, vector<2x32xf32>
    tpu.vector_store %arg11[%c12, %c0_31], %151 {strides = array<i32>} : memref<16x32xf32, #tpu.memory_space<vmem>>, vector<2x32xf32>,
    %cst_32 = arith.constant dense<0.000000e+00> : vector<2x128xf32>
    %153 = tpu.matmul %151, %24, %cst_32 {dimension_numbers = #tpu.dot_dimension_numbers<[1], [0], [0], [1], [0, 0, 1, 1], [], []>} : vector<2x32xf32>, vector<32x128xf32>, vector<2x128xf32> -> vector<2x128xf32>
    %154 = arith.addf %23, %153 : vector<2x128xf32>
    %155 = arith.negf %154 : vector<2x128xf32>
    %156 = math.exp %155 : vector<2x128xf32>
    %cst_33 = arith.constant 1.000000e+00 : f32
    %157 = vector.broadcast %cst_33 : f32 to vector<2x128xf32>
    %158 = arith.addf %157, %156 : vector<2x128xf32>
    %159 = arith.divf %157, %158 : vector<2x128xf32>
    %160 = vector.extract_strided_slice %159 {offsets = [0, 0], sizes = [2, 32], strides = [1, 1]} : vector<2x128xf32> to vector<2x32xf32>
    %161 = vector.extract_strided_slice %159 {offsets = [0, 32], sizes = [2, 32], strides = [1, 1]} : vector<2x128xf32> to vector<2x32xf32>
    %162 = vector.extract_strided_slice %159 {offsets = [0, 96], sizes = [2, 32], strides = [1, 1]} : vector<2x128xf32> to vector<2x32xf32>
    %163 = vector.extract_strided_slice %154 {offsets = [0, 64], sizes = [2, 32], strides = [1, 1]} : vector<2x128xf32> to vector<2x32xf32>
    %164 = math.tanh %163 : vector<2x32xf32>
    %165 = arith.mulf %161, %149 : vector<2x32xf32>
    %166 = arith.mulf %160, %164 : vector<2x32xf32>
    %167 = arith.addf %165, %166 : vector<2x32xf32>
    %168 = math.tanh %167 : vector<2x32xf32>
    %169 = arith.mulf %162, %168 : vector<2x32xf32>
    %c14 = arith.constant 14 : index
    %c0_34 = arith.constant 0 : index
    %170 = vector.load %arg11[%c14, %c0_34] : memref<16x32xf32, #tpu.memory_space<vmem>>, vector<2x32xf32>
    tpu.vector_store %arg11[%c14, %c0_34], %169 {strides = array<i32>} : memref<16x32xf32, #tpu.memory_space<vmem>>, vector<2x32xf32>,
    %c0_35 = arith.constant 0 : index
    %c0_36 = arith.constant 0 : index
    %171 = vector.load %arg11[%c0_35, %c0_36] : memref<16x32xf32, #tpu.memory_space<vmem>>, vector<16x32xf32>
    %c0_37 = arith.constant 0 : index
    %c0_38 = arith.constant 0 : index
    %172 = vector.load %arg5[%c0_37, %c0_38] : memref<32x128xf32, #tpu.memory_space<vmem>>, vector<32x128xf32>
    %cst_39 = arith.constant dense<0.000000e+00> : vector<16x128xf32>
    %173 = tpu.matmul %171, %172, %cst_39 {dimension_numbers = #tpu.dot_dimension_numbers<[1], [0], [0], [1], [0, 0, 1, 1], [], []>} : vector<16x32xf32>, vector<32x128xf32>, vector<16x128xf32> -> vector<16x128xf32>
    %c0_40 = arith.constant 0 : index
    %c0_41 = arith.constant 0 : index
    %174 = vector.load %arg7[%c0_40, %c0_41] : memref<1x128xf32, #tpu.memory_space<vmem>>, vector<1x128xf32>
    %175 = vector.broadcast %174 : vector<1x128xf32> to vector<16x128xf32>
    %176 = arith.addf %173, %175 : vector<16x128xf32>
    %177 = vector.extract_strided_slice %176 {offsets = [0, 0], sizes = [2, 128], strides = [1, 1]} : vector<16x128xf32> to vector<2x128xf32>
    %178 = vector.extract_strided_slice %176 {offsets = [2, 0], sizes = [2, 128], strides = [1, 1]} : vector<16x128xf32> to vector<2x128xf32>
    %179 = vector.extract_strided_slice %176 {offsets = [4, 0], sizes = [2, 128], strides = [1, 1]} : vector<16x128xf32> to vector<2x128xf32>
    %180 = vector.extract_strided_slice %176 {offsets = [6, 0], sizes = [2, 128], strides = [1, 1]} : vector<16x128xf32> to vector<2x128xf32>
    %181 = vector.extract_strided_slice %176 {offsets = [8, 0], sizes = [2, 128], strides = [1, 1]} : vector<16x128xf32> to vector<2x128xf32>
    %182 = vector.extract_strided_slice %176 {offsets = [10, 0], sizes = [2, 128], strides = [1, 1]} : vector<16x128xf32> to vector<2x128xf32>
    %183 = vector.extract_strided_slice %176 {offsets = [12, 0], sizes = [2, 128], strides = [1, 1]} : vector<16x128xf32> to vector<2x128xf32>
    %184 = vector.extract_strided_slice %176 {offsets = [14, 0], sizes = [2, 128], strides = [1, 1]} : vector<16x128xf32> to vector<2x128xf32>
    %c0_42 = arith.constant 0 : index
    %c0_43 = arith.constant 0 : index
    %185 = vector.load %arg6[%c0_42, %c0_43] : memref<32x128xf32, #tpu.memory_space<vmem>>, vector<32x128xf32>
    %cst_44 = arith.constant 0.000000e+00 : f32
    %186 = vector.broadcast %cst_44 : f32 to vector<2x32xf32>
    %cst_45 = arith.constant 0.000000e+00 : f32
    %187 = vector.broadcast %cst_45 : f32 to vector<2x32xf32>
    %cst_46 = arith.constant dense<0.000000e+00> : vector<2x128xf32>
    %188 = tpu.matmul %186, %185, %cst_46 {dimension_numbers = #tpu.dot_dimension_numbers<[1], [0], [0], [1], [0, 0, 1, 1], [], []>} : vector<2x32xf32>, vector<32x128xf32>, vector<2x128xf32> -> vector<2x128xf32>
    %189 = arith.addf %177, %188 : vector<2x128xf32>
    %190 = arith.negf %189 : vector<2x128xf32>
    %191 = math.exp %190 : vector<2x128xf32>
    %cst_47 = arith.constant 1.000000e+00 : f32
    %192 = vector.broadcast %cst_47 : f32 to vector<2x128xf32>
    %193 = arith.addf %192, %191 : vector<2x128xf32>
    %194 = arith.divf %192, %193 : vector<2x128xf32>
    %195 = vector.extract_strided_slice %194 {offsets = [0, 0], sizes = [2, 32], strides = [1, 1]} : vector<2x128xf32> to vector<2x32xf32>
    %196 = vector.extract_strided_slice %194 {offsets = [0, 32], sizes = [2, 32], strides = [1, 1]} : vector<2x128xf32> to vector<2x32xf32>
    %197 = vector.extract_strided_slice %194 {offsets = [0, 96], sizes = [2, 32], strides = [1, 1]} : vector<2x128xf32> to vector<2x32xf32>
    %198 = vector.extract_strided_slice %189 {offsets = [0, 64], sizes = [2, 32], strides = [1, 1]} : vector<2x128xf32> to vector<2x32xf32>
    %199 = math.tanh %198 : vector<2x32xf32>
    %200 = arith.mulf %196, %187 : vector<2x32xf32>
    %201 = arith.mulf %195, %199 : vector<2x32xf32>
    %202 = arith.addf %200, %201 : vector<2x32xf32>
    %203 = math.tanh %202 : vector<2x32xf32>
    %204 = arith.mulf %197, %203 : vector<2x32xf32>
    %cst_48 = arith.constant dense<0.000000e+00> : vector<2x128xf32>
    %205 = tpu.matmul %204, %185, %cst_48 {dimension_numbers = #tpu.dot_dimension_numbers<[1], [0], [0], [1], [0, 0, 1, 1], [], []>} : vector<2x32xf32>, vector<32x128xf32>, vector<2x128xf32> -> vector<2x128xf32>
    %206 = arith.addf %178, %205 : vector<2x128xf32>
    %207 = arith.negf %206 : vector<2x128xf32>
    %208 = math.exp %207 : vector<2x128xf32>
    %cst_49 = arith.constant 1.000000e+00 : f32
    %209 = vector.broadcast %cst_49 : f32 to vector<2x128xf32>
    %210 = arith.addf %209, %208 : vector<2x128xf32>
    %211 = arith.divf %209, %210 : vector<2x128xf32>
    %212 = vector.extract_strided_slice %211 {offsets = [0, 0], sizes = [2, 32], strides = [1, 1]} : vector<2x128xf32> to vector<2x32xf32>
    %213 = vector.extract_strided_slice %211 {offsets = [0, 32], sizes = [2, 32], strides = [1, 1]} : vector<2x128xf32> to vector<2x32xf32>
    %214 = vector.extract_strided_slice %211 {offsets = [0, 96], sizes = [2, 32], strides = [1, 1]} : vector<2x128xf32> to vector<2x32xf32>
    %215 = vector.extract_strided_slice %206 {offsets = [0, 64], sizes = [2, 32], strides = [1, 1]} : vector<2x128xf32> to vector<2x32xf32>
    %216 = math.tanh %215 : vector<2x32xf32>
    %217 = arith.mulf %213, %202 : vector<2x32xf32>
    %218 = arith.mulf %212, %216 : vector<2x32xf32>
    %219 = arith.addf %217, %218 : vector<2x32xf32>
    %220 = math.tanh %219 : vector<2x32xf32>
    %221 = arith.mulf %214, %220 : vector<2x32xf32>
    %cst_50 = arith.constant dense<0.000000e+00> : vector<2x128xf32>
    %222 = tpu.matmul %221, %185, %cst_50 {dimension_numbers = #tpu.dot_dimension_numbers<[1], [0], [0], [1], [0, 0, 1, 1], [], []>} : vector<2x32xf32>, vector<32x128xf32>, vector<2x128xf32> -> vector<2x128xf32>
    %223 = arith.addf %179, %222 : vector<2x128xf32>
    %224 = arith.negf %223 : vector<2x128xf32>
    %225 = math.exp %224 : vector<2x128xf32>
    %cst_51 = arith.constant 1.000000e+00 : f32
    %226 = vector.broadcast %cst_51 : f32 to vector<2x128xf32>
    %227 = arith.addf %226, %225 : vector<2x128xf32>
    %228 = arith.divf %226, %227 : vector<2x128xf32>
    %229 = vector.extract_strided_slice %228 {offsets = [0, 0], sizes = [2, 32], strides = [1, 1]} : vector<2x128xf32> to vector<2x32xf32>
    %230 = vector.extract_strided_slice %228 {offsets = [0, 32], sizes = [2, 32], strides = [1, 1]} : vector<2x128xf32> to vector<2x32xf32>
    %231 = vector.extract_strided_slice %228 {offsets = [0, 96], sizes = [2, 32], strides = [1, 1]} : vector<2x128xf32> to vector<2x32xf32>
    %232 = vector.extract_strided_slice %223 {offsets = [0, 64], sizes = [2, 32], strides = [1, 1]} : vector<2x128xf32> to vector<2x32xf32>
    %233 = math.tanh %232 : vector<2x32xf32>
    %234 = arith.mulf %230, %219 : vector<2x32xf32>
    %235 = arith.mulf %229, %233 : vector<2x32xf32>
    %236 = arith.addf %234, %235 : vector<2x32xf32>
    %237 = math.tanh %236 : vector<2x32xf32>
    %238 = arith.mulf %231, %237 : vector<2x32xf32>
    %cst_52 = arith.constant dense<0.000000e+00> : vector<2x128xf32>
    %239 = tpu.matmul %238, %185, %cst_52 {dimension_numbers = #tpu.dot_dimension_numbers<[1], [0], [0], [1], [0, 0, 1, 1], [], []>} : vector<2x32xf32>, vector<32x128xf32>, vector<2x128xf32> -> vector<2x128xf32>
    %240 = arith.addf %180, %239 : vector<2x128xf32>
    %241 = arith.negf %240 : vector<2x128xf32>
    %242 = math.exp %241 : vector<2x128xf32>
    %cst_53 = arith.constant 1.000000e+00 : f32
    %243 = vector.broadcast %cst_53 : f32 to vector<2x128xf32>
    %244 = arith.addf %243, %242 : vector<2x128xf32>
    %245 = arith.divf %243, %244 : vector<2x128xf32>
    %246 = vector.extract_strided_slice %245 {offsets = [0, 0], sizes = [2, 32], strides = [1, 1]} : vector<2x128xf32> to vector<2x32xf32>
    %247 = vector.extract_strided_slice %245 {offsets = [0, 32], sizes = [2, 32], strides = [1, 1]} : vector<2x128xf32> to vector<2x32xf32>
    %248 = vector.extract_strided_slice %245 {offsets = [0, 96], sizes = [2, 32], strides = [1, 1]} : vector<2x128xf32> to vector<2x32xf32>
    %249 = vector.extract_strided_slice %240 {offsets = [0, 64], sizes = [2, 32], strides = [1, 1]} : vector<2x128xf32> to vector<2x32xf32>
    %250 = math.tanh %249 : vector<2x32xf32>
    %251 = arith.mulf %247, %236 : vector<2x32xf32>
    %252 = arith.mulf %246, %250 : vector<2x32xf32>
    %253 = arith.addf %251, %252 : vector<2x32xf32>
    %254 = math.tanh %253 : vector<2x32xf32>
    %255 = arith.mulf %248, %254 : vector<2x32xf32>
    %cst_54 = arith.constant dense<0.000000e+00> : vector<2x128xf32>
    %256 = tpu.matmul %255, %185, %cst_54 {dimension_numbers = #tpu.dot_dimension_numbers<[1], [0], [0], [1], [0, 0, 1, 1], [], []>} : vector<2x32xf32>, vector<32x128xf32>, vector<2x128xf32> -> vector<2x128xf32>
    %257 = arith.addf %181, %256 : vector<2x128xf32>
    %258 = arith.negf %257 : vector<2x128xf32>
    %259 = math.exp %258 : vector<2x128xf32>
    %cst_55 = arith.constant 1.000000e+00 : f32
    %260 = vector.broadcast %cst_55 : f32 to vector<2x128xf32>
    %261 = arith.addf %260, %259 : vector<2x128xf32>
    %262 = arith.divf %260, %261 : vector<2x128xf32>
    %263 = vector.extract_strided_slice %262 {offsets = [0, 0], sizes = [2, 32], strides = [1, 1]} : vector<2x128xf32> to vector<2x32xf32>
    %264 = vector.extract_strided_slice %262 {offsets = [0, 32], sizes = [2, 32], strides = [1, 1]} : vector<2x128xf32> to vector<2x32xf32>
    %265 = vector.extract_strided_slice %262 {offsets = [0, 96], sizes = [2, 32], strides = [1, 1]} : vector<2x128xf32> to vector<2x32xf32>
    %266 = vector.extract_strided_slice %257 {offsets = [0, 64], sizes = [2, 32], strides = [1, 1]} : vector<2x128xf32> to vector<2x32xf32>
    %267 = math.tanh %266 : vector<2x32xf32>
    %268 = arith.mulf %264, %253 : vector<2x32xf32>
    %269 = arith.mulf %263, %267 : vector<2x32xf32>
    %270 = arith.addf %268, %269 : vector<2x32xf32>
    %271 = math.tanh %270 : vector<2x32xf32>
    %272 = arith.mulf %265, %271 : vector<2x32xf32>
    %cst_56 = arith.constant dense<0.000000e+00> : vector<2x128xf32>
    %273 = tpu.matmul %272, %185, %cst_56 {dimension_numbers = #tpu.dot_dimension_numbers<[1], [0], [0], [1], [0, 0, 1, 1], [], []>} : vector<2x32xf32>, vector<32x128xf32>, vector<2x128xf32> -> vector<2x128xf32>
    %274 = arith.addf %182, %273 : vector<2x128xf32>
    %275 = arith.negf %274 : vector<2x128xf32>
    %276 = math.exp %275 : vector<2x128xf32>
    %cst_57 = arith.constant 1.000000e+00 : f32
    %277 = vector.broadcast %cst_57 : f32 to vector<2x128xf32>
    %278 = arith.addf %277, %276 : vector<2x128xf32>
    %279 = arith.divf %277, %278 : vector<2x128xf32>
    %280 = vector.extract_strided_slice %279 {offsets = [0, 0], sizes = [2, 32], strides = [1, 1]} : vector<2x128xf32> to vector<2x32xf32>
    %281 = vector.extract_strided_slice %279 {offsets = [0, 32], sizes = [2, 32], strides = [1, 1]} : vector<2x128xf32> to vector<2x32xf32>
    %282 = vector.extract_strided_slice %279 {offsets = [0, 96], sizes = [2, 32], strides = [1, 1]} : vector<2x128xf32> to vector<2x32xf32>
    %283 = vector.extract_strided_slice %274 {offsets = [0, 64], sizes = [2, 32], strides = [1, 1]} : vector<2x128xf32> to vector<2x32xf32>
    %284 = math.tanh %283 : vector<2x32xf32>
    %285 = arith.mulf %281, %270 : vector<2x32xf32>
    %286 = arith.mulf %280, %284 : vector<2x32xf32>
    %287 = arith.addf %285, %286 : vector<2x32xf32>
    %288 = math.tanh %287 : vector<2x32xf32>
    %289 = arith.mulf %282, %288 : vector<2x32xf32>
    %cst_58 = arith.constant dense<0.000000e+00> : vector<2x128xf32>
    %290 = tpu.matmul %289, %185, %cst_58 {dimension_numbers = #tpu.dot_dimension_numbers<[1], [0], [0], [1], [0, 0, 1, 1], [], []>} : vector<2x32xf32>, vector<32x128xf32>, vector<2x128xf32> -> vector<2x128xf32>
    %291 = arith.addf %183, %290 : vector<2x128xf32>
    %292 = arith.negf %291 : vector<2x128xf32>
    %293 = math.exp %292 : vector<2x128xf32>
    %cst_59 = arith.constant 1.000000e+00 : f32
    %294 = vector.broadcast %cst_59 : f32 to vector<2x128xf32>
    %295 = arith.addf %294, %293 : vector<2x128xf32>
    %296 = arith.divf %294, %295 : vector<2x128xf32>
    %297 = vector.extract_strided_slice %296 {offsets = [0, 0], sizes = [2, 32], strides = [1, 1]} : vector<2x128xf32> to vector<2x32xf32>
    %298 = vector.extract_strided_slice %296 {offsets = [0, 32], sizes = [2, 32], strides = [1, 1]} : vector<2x128xf32> to vector<2x32xf32>
    %299 = vector.extract_strided_slice %296 {offsets = [0, 96], sizes = [2, 32], strides = [1, 1]} : vector<2x128xf32> to vector<2x32xf32>
    %300 = vector.extract_strided_slice %291 {offsets = [0, 64], sizes = [2, 32], strides = [1, 1]} : vector<2x128xf32> to vector<2x32xf32>
    %301 = math.tanh %300 : vector<2x32xf32>
    %302 = arith.mulf %298, %287 : vector<2x32xf32>
    %303 = arith.mulf %297, %301 : vector<2x32xf32>
    %304 = arith.addf %302, %303 : vector<2x32xf32>
    %305 = math.tanh %304 : vector<2x32xf32>
    %306 = arith.mulf %299, %305 : vector<2x32xf32>
    %cst_60 = arith.constant dense<0.000000e+00> : vector<2x128xf32>
    %307 = tpu.matmul %306, %185, %cst_60 {dimension_numbers = #tpu.dot_dimension_numbers<[1], [0], [0], [1], [0, 0, 1, 1], [], []>} : vector<2x32xf32>, vector<32x128xf32>, vector<2x128xf32> -> vector<2x128xf32>
    %308 = arith.addf %184, %307 : vector<2x128xf32>
    %309 = arith.negf %308 : vector<2x128xf32>
    %310 = math.exp %309 : vector<2x128xf32>
    %cst_61 = arith.constant 1.000000e+00 : f32
    %311 = vector.broadcast %cst_61 : f32 to vector<2x128xf32>
    %312 = arith.addf %311, %310 : vector<2x128xf32>
    %313 = arith.divf %311, %312 : vector<2x128xf32>
    %314 = vector.extract_strided_slice %313 {offsets = [0, 0], sizes = [2, 32], strides = [1, 1]} : vector<2x128xf32> to vector<2x32xf32>
    %315 = vector.extract_strided_slice %313 {offsets = [0, 32], sizes = [2, 32], strides = [1, 1]} : vector<2x128xf32> to vector<2x32xf32>
    %316 = vector.extract_strided_slice %313 {offsets = [0, 96], sizes = [2, 32], strides = [1, 1]} : vector<2x128xf32> to vector<2x32xf32>
    %317 = vector.extract_strided_slice %308 {offsets = [0, 64], sizes = [2, 32], strides = [1, 1]} : vector<2x128xf32> to vector<2x32xf32>
    %318 = math.tanh %317 : vector<2x32xf32>
    %319 = arith.mulf %315, %304 : vector<2x32xf32>
    %320 = arith.mulf %314, %318 : vector<2x32xf32>
    %321 = arith.addf %319, %320 : vector<2x32xf32>
    %322 = math.tanh %321 : vector<2x32xf32>
    %323 = arith.mulf %316, %322 : vector<2x32xf32>
    %c0_62 = arith.constant 0 : index
    %c0_63 = arith.constant 0 : index
    %324 = vector.load %arg8[%c0_62, %c0_63] : memref<32x5xf32, #tpu.memory_space<vmem>>, vector<32x5xf32>
    %cst_64 = arith.constant dense<0.000000e+00> : vector<2x5xf32>
    %325 = tpu.matmul %323, %324, %cst_64 {dimension_numbers = #tpu.dot_dimension_numbers<[1], [0], [0], [1], [0, 0, 1, 1], [], []>} : vector<2x32xf32>, vector<32x5xf32>, vector<2x5xf32> -> vector<2x5xf32>
    %c0_65 = arith.constant 0 : index
    %c0_66 = arith.constant 0 : index
    %326 = vector.load %arg9[%c0_65, %c0_66] : memref<1x5xf32, #tpu.memory_space<vmem>>, vector<1x5xf32>
    %327 = vector.broadcast %326 : vector<1x5xf32> to vector<2x5xf32>
    %328 = arith.addf %325, %327 : vector<2x5xf32>
    %c0_67 = arith.constant 0 : index
    %c0_68 = arith.constant 0 : index
    %329 = vector.load %arg10[%c0_67, %c0_68] : memref<2x5xf32, #tpu.memory_space<vmem>>, vector<2x5xf32>
    tpu.vector_store %arg10[%c0_67, %c0_68], %328 {strides = array<i32>} : memref<2x5xf32, #tpu.memory_space<vmem>>, vector<2x5xf32>,
    return
  }
  func.func @transform_0(%arg0: i32) -> (i32, i32, i32) {
    %c0_i32 = arith.constant 0 : i32
    %c0_i32_0 = arith.constant 0 : i32
    %c0_i32_1 = arith.constant 0 : i32
    %c0_i32_2 = arith.constant 0 : i32
    return %c0_i32, %c0_i32_0, %c0_i32_1 : i32, i32, i32
  }
  func.func @transform_1(%arg0: i32) -> (i32, i32) {
    %c0_i32 = arith.constant 0 : i32
    %c0_i32_0 = arith.constant 0 : i32
    %c0_i32_1 = arith.constant 0 : i32
    return %c0_i32, %c0_i32_0 : i32, i32
  }
  func.func @transform_2(%arg0: i32) -> (i32, i32) {
    %c0_i32 = arith.constant 0 : i32
    %c0_i32_0 = arith.constant 0 : i32
    %c0_i32_1 = arith.constant 0 : i32
    return %c0_i32, %c0_i32_0 : i32, i32
  }
  func.func @transform_3(%arg0: i32) -> (i32, i32) {
    %c0_i32 = arith.constant 0 : i32
    %c0_i32_0 = arith.constant 0 : i32
    %c0_i32_1 = arith.constant 0 : i32
    return %c0_i32, %c0_i32_0 : i32, i32
  }
  func.func @transform_4(%arg0: i32) -> (i32, i32) {
    %c0_i32 = arith.constant 0 : i32
    %c0_i32_0 = arith.constant 0 : i32
    %c0_i32_1 = arith.constant 0 : i32
    return %c0_i32, %c0_i32_0 : i32, i32
  }
  func.func @transform_5(%arg0: i32) -> (i32, i32) {
    %c0_i32 = arith.constant 0 : i32
    %c0_i32_0 = arith.constant 0 : i32
    %c0_i32_1 = arith.constant 0 : i32
    return %c0_i32, %c0_i32_0 : i32, i32
  }
  func.func @transform_6(%arg0: i32) -> (i32, i32) {
    %c0_i32 = arith.constant 0 : i32
    %c0_i32_0 = arith.constant 0 : i32
    %c0_i32_1 = arith.constant 0 : i32
    return %c0_i32, %c0_i32_0 : i32, i32
  }
  func.func @transform_7(%arg0: i32) -> (i32, i32) {
    %c0_i32 = arith.constant 0 : i32
    %c0_i32_0 = arith.constant 0 : i32
    %c0_i32_1 = arith.constant 0 : i32
    return %c0_i32, %c0_i32_0 : i32, i32
  }
  func.func @transform_8(%arg0: i32) -> (i32, i32) {
    %c0_i32 = arith.constant 0 : i32
    %c0_i32_0 = arith.constant 0 : i32
    %c0_i32_1 = arith.constant 0 : i32
    return %c0_i32, %c0_i32_0 : i32, i32
  }
  func.func @transform_9(%arg0: i32) -> (i32, i32) {
    %c0_i32 = arith.constant 0 : i32
    %c0_i32_0 = arith.constant 0 : i32
    %c0_i32_1 = arith.constant 0 : i32
    return %c0_i32, %c0_i32_0 : i32, i32
  }
}

</mosaic_0001>

<bundles_post_ra>
// kernel: tpu_custom_call.1
= control target key start
LH: loop header
LB: loop body
LE: loop exit
PB: predicated region body
PF: predicated region fallthrough
CT: control target
= control target key end

     0   :  { %14 = vsyncpa [#allocation4], 0  ;;  %s2536_s0 = inlined_call_operand.hbm [shape: f32[2,8,16], index: 0, kind: input, shape index: {}]   ;;  %s2537_s1 = inlined_call_operand.hbm [shape: f32[16,128], index: 1, kind: input, shape index: {}]   ;;  %s2538_s2 = inlined_call_operand.vmem [shape: f32[32,128], index: 2, kind: input, shape index: {}]   ;;  %s2539_s3 = inlined_call_operand.vmem [shape: f32[1,128], index: 3, kind: input, shape index: {}]   ;;  %s2540_s4 = inlined_call_operand.hbm [shape: f32[32,128], index: 4, kind: input, shape index: {}]   ;;  %s2541_s5 = inlined_call_operand.hbm [shape: f32[32,128], index: 5, kind: input, shape index: {}]   ;;  %s2542_s6 = inlined_call_operand.vmem [shape: f32[1,128], index: 6, kind: input, shape index: {}]   ;;  %s2543_s7 = inlined_call_operand.vmem [shape: f32[32,5], index: 7, kind: input, shape index: {}]   ;;  %s2544_s8 = inlined_call_operand.vmem [shape: f32[1,5], index: 8, kind: input, shape index: {}]   ;;  %s2545_s9 = inlined_call_operand.hbm [shape: f32[2,5], index: 9, kind: output, shape index: {}]  }
   0x1   :  { %15 = vsyncpa [#allocation7], 0 }
   0x2   :  { %16 = vsyncpa [#allocation10], 0 }
   0x3   :  { %17 = vsyncpa [#allocation5], 0  ;;  %s35_s11 = sshll.u32 %s2537_s1, 4  ;;  %s2133_s12 = smov [#allocation6]   ;;  %s36_s11 = int_to_ptr.hbm [resolvable:$true] %s35_s11 }
   0x4   :  { %s37_s13 = sshll.u32 %s2133_s12, 4  ;;  %s22_s16 = sshll.u32 %s2536_s0, 4  ;;  %s38_s13 = int_to_ptr.vmem [resolvable:$true] %s37_s13  ;;  %s23_s16 = int_to_ptr.hbm [resolvable:$true] %s22_s16 }
   0x5   :  { %s2134_s17 = smov 128   ;;  %s2135_s18 = smov 8  }
   0x6   :  { %43 = dma.hbm_to_vmem [thread:$0]  %s36_s11, 256, %s38_s13, [#allocation7], %s2134_s17, %s2134_s17, %s2135_s18  }
   0x7   :  { %s2136_s19 = smov [#allocation3]   ;;  %s52_s23 = sshll.u32 %s2540_s4, 4  ;;  %s53_s23 = int_to_ptr.hbm [resolvable:$true] %s52_s23 }
   0x8   :  { %s24_s20 = sshll.u32 %s2136_s19, 4  ;;  %s65_s25 = sshll.u32 %s2541_s5, 4  ;;  %s25_s20 = int_to_ptr.vmem [resolvable:$true] %s24_s20  ;;  %s66_s25 = int_to_ptr.hbm [resolvable:$true] %s65_s25 }
   0x9   :  { %30 = dma.hbm_to_vmem [thread:$0]  %s23_s16, 256, %s25_s20, [#allocation4], %s2134_s17, %s2134_s17, %s2135_s18  }
   0xa   :  { %s2137_s26 = smov [#allocation8]   ;;  %s2138_s0 = smov [#allocation9]  }
   0xb   :  { %s54_s27 = sshll.u32 %s2137_s26, 4  ;;  %s67_s28 = sshll.u32 %s2138_s0, 4  ;;  %s55_s27 = int_to_ptr.vmem [resolvable:$true] %s54_s27  ;;  %s68_s28 = int_to_ptr.vmem [resolvable:$true] %s67_s28 }
   0xc   :  { %60 = dma.hbm_to_vmem [thread:$0]  %s53_s23, 512, %s55_s27, [#allocation7], %s2134_s17, %s2134_s17, %s2135_s18  }
   0xd   :  { %73 = dma.hbm_to_vmem [thread:$0]  %s66_s25, 512, %s68_s28, [#allocation10], %s2134_s17, %s2134_s17, %s2135_s18  }
   0xe   :  { %2125 = dma.done.wait [#allocation4], 256  }
   0xf   :  { %2126 = vsyncadd [#allocation4], 4294967040 }
  0x10   :  { %2127 = dma.done.wait [#allocation7], 768  }
  0x11   :  { %2128 = vsyncadd [#allocation7], 4294966528 }
  0x12   :  { %2129 = dma.done.wait [#allocation10], 512  }
  0x13   :  { %2130 = vsyncadd [#allocation10], 4294966784  ;;  %v99_v0 = vld [vmem:[#allocation6 + $0x8] sm:$0xff]  ;;  %v137_v1 = vld [vmem:[%s2538_s2 + $0x18] sm:$0xff]  ;;  %vm104_vm0 = vcmask 130048   ;;  %v2139_v7 = vmov 0.0  }
  0x14   :  { %v98_v2 = vld [vmem:[#allocation6] sm:$0xff]  ;;  %125 = vmatpush.msra.mxu0 %v99_v0  ;;  %154 = vmatpush.msra.mxu1 %v137_v1  ;;  %v136_v3 = vld [vmem:[%s2538_s2 + $0x10] sm:$0xff]  ;;  %v135_v5 = vld [vmem:[%s2538_s2 + $0x8] sm:$0xff]  ;;  %s2140_s15 = smov 64   ;;  %vm245_vm9 = vcmask 1041409   ;;  %vm250_vm10 = vcmask 254976  }
  0x15   :  { %v96_v4 = vld [vmem:[#allocation3] sm:$0xff]  ;;  %266 = vmatpush.msra.mxu2 %v137_v1  ;;  %388 = vmatpush.msra.mxu3 %v137_v1  ;;  %v134_v6 = vld [vmem:[%s2538_s2] sm:$0xff]  ;;  %v97_v8 = vld [vmem:[#allocation3 + $0x8] sm:$0xff]  ;;  %vm138_vm11 = vcmask 261120   ;;  %s2142_s26 = smov [#allocation11]  }
  0x16   :  { %126 = vmatpush.msra.mxu0 %v98_v2  ;;  %155 = vmatpush.msra.mxu1 %v136_v3  ;;  %v1810_v11 = vld [vmem:[%s2539_s3] ss:$0 sm:$0xff]  ;;  %s2141_s3 = smov 32   ;;  %s1743_s27 = sshll.u32 %s2142_s26, 4  ;;  %s1744_s27 = int_to_ptr.vmem [resolvable:$true] %s1743_s27 }
  0x17   :  { %1757 = vmatmul.msk.f32.vlgmr.msra.gmra.mxu0 %vm104_vm0, %v96_v4  ;;  %267 = vmatpush.msra.mxu2 %v136_v3 }
  0x18   :  { %156 = vmatpush.msra.mxu1 %v135_v5  ;;  %389 = vmatpush.msra.mxu3 %v136_v3 }
  0x19   :  { %268 = vmatpush.msra.mxu2 %v135_v5  ;;  %884 = vmatpush.msrb.mxu0 %v137_v1 }
  0x1a   :  { %157 = vmatpush.msra.mxu1 %v134_v6  ;;  %390 = vmatpush.msra.mxu3 %v135_v5 }
  0x1b   :  { %158 = vmatmul.f32.vlgmr.msra.gmra.mxu1 %v2139_v7  ;;  %269 = vmatpush.msra.mxu2 %v134_v6 }
  0x1c   :  { %391 = vmatpush.msra.mxu3 %v134_v6  ;;  %512 = vmatpush.msrb.mxu1 %v137_v1 }
  0x1d   :  { %636 = vmatpush.msrb.mxu2 %v137_v1  ;;  %885 = vmatpush.msrb.mxu0 %v136_v3 }
  0x1e   :  { %760 = vmatpush.msrb.mxu3 %v137_v1  ;;  %513 = vmatpush.msrb.mxu1 %v136_v3 }
  0x1f   :  { %1758 = vmatmul.msk.f32.gmra.mxu0 %vm104_vm0, %v97_v8  ;;  %637 = vmatpush.msrb.mxu2 %v136_v3 }
  0x20   :  { %514 = vmatpush.msrb.mxu1 %v135_v5  ;;  %761 = vmatpush.msrb.mxu3 %v136_v3 }
  0x21   :  { %638 = vmatpush.msrb.mxu2 %v135_v5  ;;  %886 = vmatpush.msrb.mxu0 %v135_v5 }
  0x22   :  { %515 = vmatpush.msrb.mxu1 %v134_v6  ;;  %762 = vmatpush.msrb.mxu3 %v135_v5 }
  0x23   :  { %639 = vmatpush.msrb.mxu2 %v134_v6  ;;  %887 = vmatpush.msrb.mxu0 %v134_v6 }
  0x24   :  { %763 = vmatpush.msrb.mxu3 %v134_v6  ;;  %1008 = vmatpush.msra.mxu1 %v137_v1 }
  0x26   :  { %1009 = vmatpush.msra.mxu1 %v136_v3 }
  0x28   :  { %1010 = vmatpush.msra.mxu1 %v135_v5 }
  0x2a   :  { %1011 = vmatpush.msra.mxu1 %v134_v6 }
  0x94   :  { %v128_v9 = vpop.f32.mrf.mxu0 }
  0x95   :  { %v2226_v16 = vadd.f32 %v1810_v11, %v128_v9 }
  0x98   :  { %v159_v10 = vpop.f32.mrf.mxu1 }
  0x99   :  { %v163_v12 = vrot.slane %v159_v10, 1  ;;  %v166_v17 = vadd.f32 %v159_v10, %v2226_v16 }
  0x9b   :  { %v1759_v21 = vmul.f32 -1.442695, %v166_v17 }
  0x9c   :  { %v131_v13 = vpop.f32.mrf.mxu0 }
  0x9d   :  { %v2223_v14 = vadd.f32 %v1810_v11, %v131_v13 }
  0x9f   :  { %v167_v15 = vadd.f32 %v163_v12, %v2223_v14 }
  0xa1   :  { %1813 = vtanh.f32 %v167_v15  ;;  %v1760_v20 = vmul.f32 -1.442695, %v167_v15 }
  0xa2   :  { %1815 = vtanh.f32 %v166_v17 }
  0xa3   :  { %1817 = vpow2.f32 %v1760_v20 }
  0xa4   :  { %1819 = vpow2.f32 %v1759_v21 }
  0xa7   :  { %v1814_v18 = vpop.eup %1813 }
  0xa8   :  { %214 = vrot.lane.b32.xlu0 %v1814_v18, %s2140_s15  ;;  %v1816_v19 = vpop.eup %1815 }
  0xa9   :  { %v1818_v22 = vpop.eup %1817 }
  0xaa   :  { %v175_v23 = vadd.f32 1.0, %v1818_v22  ;;  %v1820_v24 = vpop.eup %1819 }
  0xab   :  { %v174_v25 = vadd.f32 1.0, %v1820_v24 }
  0xac   :  { %1821 = vrcp.f32 %v175_v23  ;;  %v202_v34 = vand.u32 2147483648, %v175_v23  ;;  %vm196_vm2 = vweird.f32 %v175_v23  ;;  %v200_v35 = vand.u32 2147483647, %v175_v23 }
  0xad   :  { %1823 = vrcp.f32 %v174_v25  ;;  %v187_v43 = vand.u32 2147483648, %v174_v25  ;;  %vm181_vm6 = vweird.f32 %v174_v25  ;;  %v185_v44 = vand.u32 2147483647, %v174_v25 }
  0xae   :  { %v203_v38 = vor.u32 1.1754944e-38, %v202_v34  ;;  %vm201_vm4 = vcmp.eq.f32.partialorder %v200_v35, 8.507059e+37 }
  0xaf   :  { %v188_v46 = vor.u32 1.1754944e-38, %v187_v43  ;;  %vm186_vm8 = vcmp.eq.f32.partialorder %v185_v44, 8.507059e+37 }
  0xb0   :  { %212 = vrot.lane.b32.xlu0 %v1816_v19, %s2140_s15 }
  0xb2   :  { %v1822_v26 = vpop.eup %1821 }
  0xb3   :  { %v192_v27 = vmul.f32 %v1822_v26, %v175_v23  ;;  %v1824_v29 = vpop.eup %1823  ;;  %vm197_vm1 = vweird.f32 %v1822_v26 }
  0xb4   :  { %v177_v31 = vmul.f32 %v1824_v29, %v174_v25  ;;  %vm198_vm3 = vmor %vm196_vm2, %vm197_vm1  ;;  %vm182_vm5 = vweird.f32 %v1824_v29 }
  0xb5   :  { %v193_v28 = vsub.f32 1.0, %v192_v27  ;;  %vm183_vm7 = vmor %vm181_vm6, %vm182_vm5 }
  0xb6   :  { %v178_v33 = vsub.f32 1.0, %v177_v31 }
  0xb7   :  { %v194_v30 = vmul.f32 %v1822_v26, %v193_v28 }
  0xb8   :  { %v179_v37 = vmul.f32 %v1824_v29, %v178_v33 }
  0xb9   :  { %v195_v32 = vadd.f32 %v1822_v26, %v194_v30 }
  0xba   :  { %v180_v42 = vadd.f32 %v1824_v29, %v179_v37 }
  0xbb   :  { %v199_v36 = vsel %vm198_vm3, %v1822_v26, %v195_v32 }
  0xbc   :  { %v204_v40 = vsel %vm201_vm4, %v203_v38, %v199_v36  ;;  %v184_v45 = vsel %vm183_vm7, %v1824_v29, %v180_v42  ;;  %vm363_vm4 = vcmask 1042434  }
  0xbd   :  { %v189_v48 = vsel %vm186_vm8, %v188_v46, %v184_v45  ;;  %v209_v50 = vmul.f32 0.0, %v204_v40 }
  0xbe   :  { %v208_v53 = vmul.f32 0.0, %v189_v48 }
 0x11a   :  { %v215_v39 = vpop.permute.xlu0 %214 }
 0x11b   :  { %v219_v41 = vmul.f32 %v215_v39, %v204_v40 }
 0x11d   :  { %224 = vrot.lane.b32.xlu1 %v219_v41, %s2141_s3 }
 0x122   :  { %v213_v47 = vpop.permute.xlu0 %212 }
 0x123   :  { %v218_v49 = vmul.f32 %v213_v47, %v189_v48 }
 0x125   :  { %222 = vrot.lane.b32.xlu1 %v218_v49, %s2141_s3 }
 0x18f   :  { %v225_v51 = vpop.permute.xlu1 %224 }
 0x190   :  { %v2233_v52 = vadd.f32 %v225_v51, %v209_v50 }
 0x192   :  { %1825 = vtanh.f32 %v2233_v52 }
 0x197   :  { %v223_v54 = vpop.permute.xlu1 %222 }
 0x198   :  { %v1826_v55 = vpop.eup %1825  ;;  %v2236_v56 = vadd.f32 %v223_v54, %v208_v53 }
 0x199   :  { %236 = vrot.lane.b32.xlu2 %v1826_v55, %s2140_s15 }
 0x19a   :  { %1827 = vtanh.f32 %v2236_v56  ;;  %v322_v45 = vrot.slane %v2236_v56, 7 }
 0x1a0   :  { %v1828_v57 = vpop.eup %1827 }
 0x1a1   :  { %234 = vrot.lane.b32.xlu2 %v1828_v57, %s2140_s15 }
 0x1f3   :  { %v237_v58 = vpop.permute.xlu2 %236 }
 0x1f4   :  { %v241_v59 = vmul.f32 %v237_v58, %v204_v40  ;;  %v323_v40 = vrot.slane %v2233_v52, 7 }
 0x1f6   :  { %v244_v61 = vrot.slane %v241_v59, 7 }
 0x1fb   :  { %v235_v60 = vpop.permute.xlu2 %234 }
 0x1fc   :  { %v240_v62 = vmul.f32 %v235_v60, %v189_v48 }
 0x1fe   :  { %v246_v63 = vsel %vm245_vm9, %v244_v61, %v240_v62 }
 0x1ff   :  { %247 = vrot.lane.b32.xlu0 %v246_v63, %s2141_s3 }
 0x271   :  { %v248_v0 = vpop.permute.xlu0 %247 }
 0x272   :  { %251 = vst.msk [vmem:[#allocation2] sm:$0x3] %vm250_vm10, %v248_v0  ;;  %1761 = vmatmul.msk.f32.vlgmr.msra.gmra.mxu2 %vm138_vm11, %v248_v0 }
 0x2f5   :  { %v271_v1 = vpop.f32.mrf.mxu2 }
 0x2f6   :  { %v275_v2 = vrot.slane %v271_v1, 7  ;;  %v279_v3 = vadd.f32 %v271_v1, %v2223_v14 }
 0x2f8   :  { %v278_v4 = vadd.f32 %v275_v2, %v2226_v16  ;;  %1829 = vtanh.f32 %v279_v3  ;;  %v1763_v8 = vmul.f32 -1.442695, %v279_v3 }
 0x2fa   :  { %1831 = vtanh.f32 %v278_v4  ;;  %v1762_v13 = vmul.f32 -1.442695, %v278_v4 }
 0x2fb   :  { %1833 = vpow2.f32 %v1763_v8 }
 0x2fe   :  { %v1830_v5 = vpop.eup %1829 }
 0x2ff   :  { %332 = vrot.lane.b32.xlu2 %v1830_v5, %s2140_s15 }
 0x300   :  { %v1832_v6 = vpop.eup %1831 }
 0x301   :  { %330 = vrot.lane.b32.xlu1 %v1832_v6, %s2140_s15  ;;  %v1834_v9 = vpop.eup %1833 }
 0x302   :  { %v287_v10 = vadd.f32 1.0, %v1834_v9 }
 0x304   :  { %1835 = vrcp.f32 %v287_v10  ;;  %v314_v20 = vand.u32 2147483648, %v287_v10  ;;  %vm308_vm13 = vweird.f32 %v287_v10  ;;  %v312_v22 = vand.u32 2147483647, %v287_v10 }
 0x305   :  { %1837 = vpow2.f32 %v1762_v13 }
 0x306   :  { %v315_v24 = vor.u32 1.1754944e-38, %v314_v20  ;;  %vm313_vm15 = vcmp.eq.f32.partialorder %v312_v22, 8.507059e+37 }
 0x30a   :  { %v1836_v11 = vpop.eup %1835 }
 0x30b   :  { %v304_v12 = vmul.f32 %v1836_v11, %v287_v10  ;;  %v1838_v18 = vpop.eup %1837  ;;  %vm309_vm12 = vweird.f32 %v1836_v11 }
 0x30c   :  { %v286_v21 = vadd.f32 1.0, %v1838_v18  ;;  %vm310_vm14 = vmor %vm308_vm13, %vm309_vm12 }
 0x30d   :  { %v305_v15 = vsub.f32 1.0, %v304_v12 }
 0x30e   :  { %1839 = vrcp.f32 %v286_v21  ;;  %v299_v33 = vand.u32 2147483648, %v286_v21  ;;  %vm293_vm1 = vweird.f32 %v286_v21  ;;  %v297_v34 = vand.u32 2147483647, %v286_v21 }
 0x30f   :  { %v306_v17 = vmul.f32 %v1836_v11, %v305_v15 }
 0x310   :  { %v300_v36 = vor.u32 1.1754944e-38, %v299_v33  ;;  %vm298_vm3 = vcmp.eq.f32.partialorder %v297_v34, 8.507059e+37 }
 0x311   :  { %v307_v19 = vadd.f32 %v1836_v11, %v306_v17 }
 0x313   :  { %v311_v23 = vsel %vm310_vm14, %v1836_v11, %v307_v19 }
 0x314   :  { %v316_v26 = vsel %vm313_vm15, %v315_v24, %v311_v23  ;;  %v1840_v28 = vpop.eup %1839  ;;  %vm486_vm15 = vcmask 1043459  }
 0x315   :  { %v289_v29 = vmul.f32 %v1840_v28, %v286_v21  ;;  %vm294_vm0 = vweird.f32 %v1840_v28  ;;  %v327_v41 = vmul.f32 %v323_v40, %v316_v26 }
 0x316   :  { %vm295_vm2 = vmor %vm293_vm1, %vm294_vm0 }
 0x317   :  { %v290_v30 = vsub.f32 1.0, %v289_v29 }
 0x319   :  { %v291_v31 = vmul.f32 %v1840_v28, %v290_v30 }
 0x31b   :  { %v292_v32 = vadd.f32 %v1840_v28, %v291_v31 }
 0x31d   :  { %v296_v35 = vsel %vm295_vm2, %v1840_v28, %v292_v32 }
 0x31e   :  { %v301_v38 = vsel %vm298_vm3, %v300_v36, %v296_v35 }
 0x31f   :  { %v326_v46 = vmul.f32 %v322_v45, %v301_v38 }
 0x359   :  { %v333_v25 = vpop.permute.xlu2 %332 }
 0x35a   :  { %v337_v27 = vmul.f32 %v333_v25, %v316_v26 }
 0x35c   :  { %342 = vrot.lane.b32.xlu1 %v337_v27, %s2141_s3 }
 0x373   :  { %v331_v37 = vpop.permute.xlu1 %330 }
 0x374   :  { %v336_v39 = vmul.f32 %v331_v37, %v301_v38 }
 0x376   :  { %340 = vrot.lane.b32.xlu0 %v336_v39, %s2141_s3 }
 0x3ce   :  { %v343_v42 = vpop.permute.xlu1 %342 }
 0x3cf   :  { %v2251_v43 = vadd.f32 %v343_v42, %v327_v41 }
 0x3d1   :  { %1841 = vtanh.f32 %v2251_v43  ;;  %v446_v36 = vrot.slane %v2251_v43, 7 }
 0x3d7   :  { %v1842_v44 = vpop.eup %1841 }
 0x3d8   :  { %354 = vrot.lane.b32.xlu0 %v1842_v44, %s2140_s15 }
 0x3e8   :  { %v341_v47 = vpop.permute.xlu0 %340 }
 0x3e9   :  { %v2256_v48 = vadd.f32 %v341_v47, %v326_v46 }
 0x3eb   :  { %1843 = vtanh.f32 %v2256_v48  ;;  %v445_v35 = vrot.slane %v2256_v48, 7 }
 0x3f1   :  { %v1844_v49 = vpop.eup %1843 }
 0x3f2   :  { %352 = vrot.lane.b32.xlu2 %v1844_v49, %s2140_s15 }
 0x44a   :  { %v355_v50 = vpop.permute.xlu0 %354 }
 0x44b   :  { %v359_v51 = vmul.f32 %v355_v50, %v316_v26 }
 0x44c   :  { %v353_v53 = vpop.permute.xlu2 %352 }
 0x44d   :  { %v362_v52 = vrot.slane %v359_v51, 7  ;;  %v358_v54 = vmul.f32 %v353_v53, %v301_v38 }
 0x44f   :  { %v370_v55 = vrot.slane %v358_v54, 1  ;;  %v2260_v57 = vsel %vm363_vm4, %v362_v52, %v358_v54 }
 0x451   :  { %v371_v56 = vsel %vm245_vm9, %v359_v51, %v370_v55 }
 0x452   :  { %372 = vrot.lane.b32.xlu1 %v371_v56, %s2141_s3 }
 0x4c4   :  { %v373_v58 = vpop.permute.xlu1 %372 }
 0x4c5   :  { %1764 = vmatmul.msk.f32.vlgmr.msra.gmra.mxu3 %vm138_vm11, %v373_v58 }
 0x548   :  { %v393_v59 = vpop.f32.mrf.mxu3 }
 0x549   :  { %v397_v60 = vrot.slane %v393_v59, 6  ;;  %v398_v61 = vrot.slane %v393_v59, 7 }
 0x54b   :  { %v401_v62 = vadd.f32 %v397_v60, %v2226_v16  ;;  %v402_v63 = vadd.f32 %v398_v61, %v2223_v14 }
 0x54d   :  { %1845 = vtanh.f32 %v401_v62  ;;  %v1765_v2 = vmul.f32 -1.442695, %v401_v62  ;;  %v1766_v6 = vmul.f32 -1.442695, %v402_v63 }
 0x54e   :  { %1847 = vtanh.f32 %v402_v63 }
 0x54f   :  { %1849 = vpow2.f32 %v1765_v2 }
 0x553   :  { %v1846_v0 = vpop.eup %1845 }
 0x554   :  { %v1848_v1 = vpop.eup %1847  ;;  %453 = vrot.lane.b32.xlu2 %v1846_v0, %s2140_s15 }
 0x555   :  { %455 = vrot.lane.b32.xlu0 %v1848_v1, %s2140_s15  ;;  %v1850_v3 = vpop.eup %1849 }
 0x556   :  { %v409_v4 = vadd.f32 1.0, %v1850_v3 }
 0x558   :  { %1851 = vrcp.f32 %v409_v4  ;;  %v422_v15 = vand.u32 2147483648, %v409_v4  ;;  %vm416_vm6 = vweird.f32 %v409_v4  ;;  %v420_v17 = vand.u32 2147483647, %v409_v4 }
 0x559   :  { %1853 = vpow2.f32 %v1766_v6 }
 0x55a   :  { %v423_v19 = vor.u32 1.1754944e-38, %v422_v15  ;;  %vm421_vm8 = vcmp.eq.f32.partialorder %v420_v17, 8.507059e+37 }
 0x55e   :  { %v1852_v5 = vpop.eup %1851 }
 0x55f   :  { %v412_v8 = vmul.f32 %v1852_v5, %v409_v4  ;;  %v1854_v11 = vpop.eup %1853  ;;  %vm417_vm5 = vweird.f32 %v1852_v5 }
 0x560   :  { %v410_v12 = vadd.f32 1.0, %v1854_v11  ;;  %vm418_vm7 = vmor %vm416_vm6, %vm417_vm5 }
 0x561   :  { %v413_v9 = vsub.f32 1.0, %v412_v8 }
 0x562   :  { %1855 = vrcp.f32 %v410_v12  ;;  %v437_v28 = vand.u32 2147483648, %v410_v12  ;;  %vm431_vm12 = vweird.f32 %v410_v12  ;;  %v435_v29 = vand.u32 2147483647, %v410_v12 }
 0x563   :  { %v414_v10 = vmul.f32 %v1852_v5, %v413_v9 }
 0x564   :  { %v438_v31 = vor.u32 1.1754944e-38, %v437_v28  ;;  %vm436_vm14 = vcmp.eq.f32.partialorder %v435_v29, 8.507059e+37 }
 0x565   :  { %v415_v13 = vadd.f32 %v1852_v5, %v414_v10 }
 0x567   :  { %v419_v18 = vsel %vm418_vm7, %v1852_v5, %v415_v13 }
 0x568   :  { %v424_v21 = vsel %vm421_vm8, %v423_v19, %v419_v18  ;;  %v1856_v23 = vpop.eup %1855  ;;  %vm610_vm8 = vcmask 1044484  }
 0x569   :  { %v427_v24 = vmul.f32 %v1856_v23, %v410_v12  ;;  %vm432_vm10 = vweird.f32 %v1856_v23  ;;  %v449_v37 = vmul.f32 %v445_v35, %v424_v21 }
 0x56a   :  { %vm433_vm13 = vmor %vm431_vm12, %vm432_vm10 }
 0x56b   :  { %v428_v25 = vsub.f32 1.0, %v427_v24 }
 0x56d   :  { %v429_v26 = vmul.f32 %v1856_v23, %v428_v25 }
 0x56f   :  { %v430_v27 = vadd.f32 %v1856_v23, %v429_v26 }
 0x571   :  { %v434_v30 = vsel %vm433_vm13, %v1856_v23, %v430_v27 }
 0x572   :  { %v439_v33 = vsel %vm436_vm14, %v438_v31, %v434_v30 }
 0x573   :  { %v450_v38 = vmul.f32 %v446_v36, %v439_v33 }
 0x5ae   :  { %v454_v20 = vpop.permute.xlu2 %453 }
 0x5af   :  { %v459_v22 = vmul.f32 %v454_v20, %v424_v21 }
 0x5b1   :  { %463 = vrot.lane.b32.xlu1 %v459_v22, %s2141_s3 }
 0x5c7   :  { %v456_v32 = vpop.permute.xlu0 %455 }
 0x5c8   :  { %v460_v34 = vmul.f32 %v456_v32, %v439_v33 }
 0x5ca   :  { %465 = vrot.lane.b32.xlu2 %v460_v34, %s2141_s3 }
 0x623   :  { %v464_v39 = vpop.permute.xlu1 %463 }
 0x624   :  { %v466_v40 = vpop.permute.xlu2 %465  ;;  %v2273_v41 = vadd.f32 %v464_v39, %v449_v37 }
 0x625   :  { %v2275_v42 = vadd.f32 %v466_v40, %v450_v38 }
 0x626   :  { %1857 = vtanh.f32 %v2273_v41  ;;  %v569_v32 = vrot.slane %v2273_v41, 7 }
 0x627   :  { %1859 = vtanh.f32 %v2275_v42  ;;  %v570_v37 = vrot.slane %v2275_v42, 7 }
 0x62c   :  { %v1858_v44 = vpop.eup %1857 }
 0x62d   :  { %v1860_v45 = vpop.eup %1859  ;;  %475 = vrot.lane.b32.xlu0 %v1858_v44, %s2140_s15 }
 0x62e   :  { %477 = vrot.lane.b32.xlu1 %v1860_v45, %s2140_s15 }
 0x69f   :  { %v476_v46 = vpop.permute.xlu0 %475 }
 0x6a0   :  { %v478_v43 = vpop.permute.xlu1 %477  ;;  %v481_v47 = vmul.f32 %v476_v46, %v424_v21 }
 0x6a1   :  { %v482_v48 = vmul.f32 %v478_v43, %v439_v33 }
 0x6a2   :  { %v493_v49 = vrot.slane %v481_v47, 2 }
 0x6a3   :  { %v485_v50 = vrot.slane %v482_v48, 7  ;;  %v494_v51 = vrot.slane %v482_v48, 1 }
 0x6a5   :  { %v495_v52 = vsel %vm245_vm9, %v494_v51, %v493_v49  ;;  %v2282_v53 = vsel %vm486_vm15, %v485_v50, %v481_v47 }
 0x6a6   :  { %496 = vrot.lane.b32.xlu2 %v495_v52, %s2141_s3 }
 0x700   :  { %v497_v54 = vpop.permute.xlu2 %496 }
 0x701   :  { %1767 = vmatmul.msk.f32.vlgmr.msrb.gmra.mxu1 %vm138_vm11, %v497_v54 }
 0x77e   :  { %v517_v55 = vpop.f32.mrf.mxu1 }
 0x77f   :  { %v521_v56 = vrot.slane %v517_v55, 5  ;;  %v522_v58 = vrot.slane %v517_v55, 6 }
 0x781   :  { %v525_v59 = vadd.f32 %v521_v56, %v2226_v16  ;;  %v526_v60 = vadd.f32 %v522_v58, %v2223_v14 }
 0x783   :  { %1861 = vtanh.f32 %v525_v59  ;;  %v1768_v63 = vmul.f32 -1.442695, %v525_v59  ;;  %v1769_v0 = vmul.f32 -1.442695, %v526_v60 }
 0x784   :  { %1863 = vtanh.f32 %v526_v60 }
 0x785   :  { %1865 = vpow2.f32 %v1768_v63 }
 0x786   :  { %1867 = vpow2.f32 %v1769_v0 }
 0x789   :  { %v1862_v61 = vpop.eup %1861 }
 0x78a   :  { %v1864_v62 = vpop.eup %1863  ;;  %577 = vrot.lane.b32.xlu0 %v1862_v61, %s2140_s15 }
 0x78b   :  { %579 = vrot.lane.b32.xlu1 %v1864_v62, %s2140_s15  ;;  %v1866_v1 = vpop.eup %1865 }
 0x78c   :  { %v1868_v2 = vpop.eup %1867  ;;  %v533_v3 = vadd.f32 1.0, %v1866_v1 }
 0x78d   :  { %v534_v4 = vadd.f32 1.0, %v1868_v2 }
 0x78e   :  { %1869 = vrcp.f32 %v533_v3  ;;  %v546_v18 = vand.u32 2147483648, %v533_v3  ;;  %vm540_vm2 = vweird.f32 %v533_v3  ;;  %v544_v20 = vand.u32 2147483647, %v533_v3 }
 0x78f   :  { %1871 = vrcp.f32 %v534_v4  ;;  %v561_v19 = vand.u32 2147483648, %v534_v4  ;;  %vm555_vm3 = vweird.f32 %v534_v4  ;;  %v559_v21 = vand.u32 2147483647, %v534_v4 }
 0x790   :  { %v547_v24 = vor.u32 1.1754944e-38, %v546_v18  ;;  %vm545_vm6 = vcmp.eq.f32.partialorder %v544_v20, 8.507059e+37 }
 0x791   :  { %v562_v25 = vor.u32 1.1754944e-38, %v561_v19  ;;  %vm560_vm7 = vcmp.eq.f32.partialorder %v559_v21, 8.507059e+37 }
 0x794   :  { %v1870_v5 = vpop.eup %1869 }
 0x795   :  { %v1872_v6 = vpop.eup %1871  ;;  %v536_v8 = vmul.f32 %v1870_v5, %v533_v3  ;;  %vm541_vm0 = vweird.f32 %v1870_v5 }
 0x796   :  { %v551_v9 = vmul.f32 %v1872_v6, %v534_v4  ;;  %vm556_vm1 = vweird.f32 %v1872_v6  ;;  %vm542_vm4 = vmor %vm540_vm2, %vm541_vm0 }
 0x797   :  { %v537_v10 = vsub.f32 1.0, %v536_v8  ;;  %vm557_vm5 = vmor %vm555_vm3, %vm556_vm1  ;;  %vm734_vm3 = vcmask 1045509  }
 0x798   :  { %v552_v11 = vsub.f32 1.0, %v551_v9 }
 0x799   :  { %v538_v12 = vmul.f32 %v1870_v5, %v537_v10 }
 0x79a   :  { %v553_v13 = vmul.f32 %v1872_v6, %v552_v11 }
 0x79b   :  { %v539_v15 = vadd.f32 %v1870_v5, %v538_v12 }
 0x79c   :  { %v554_v17 = vadd.f32 %v1872_v6, %v553_v13 }
 0x79d   :  { %v543_v22 = vsel %vm542_vm4, %v1870_v5, %v539_v15  ;;  %vm368_vm4 = vcmask 256001  }
 0x79e   :  { %v558_v23 = vsel %vm557_vm5, %v1872_v6, %v554_v17  ;;  %v548_v27 = vsel %vm545_vm6, %v547_v24, %v543_v22  ;;  %vm491_vm5 = vcmask 257026   ;;  %vm615_vm6 = vcmask 258051  }
 0x79f   :  { %v563_v29 = vsel %vm560_vm7, %v562_v25, %v558_v23  ;;  %v573_v33 = vmul.f32 %v569_v32, %v548_v27 }
 0x7a0   :  { %v574_v38 = vmul.f32 %v570_v37, %v563_v29 }
 0x7fc   :  { %v578_v26 = vpop.permute.xlu0 %577 }
 0x7fd   :  { %v580_v28 = vpop.permute.xlu1 %579  ;;  %v583_v30 = vmul.f32 %v578_v26, %v548_v27 }
 0x7fe   :  { %v584_v31 = vmul.f32 %v580_v28, %v563_v29 }
 0x7ff   :  { %587 = vrot.lane.b32.xlu2 %v583_v30, %s2141_s3 }
 0x800   :  { %589 = vrot.lane.b32.xlu0 %v584_v31, %s2141_s3 }
 0x859   :  { %v588_v34 = vpop.permute.xlu2 %587 }
 0x85a   :  { %v2293_v35 = vadd.f32 %v588_v34, %v573_v33 }
 0x85c   :  { %1873 = vtanh.f32 %v2293_v35 }
 0x862   :  { %v1874_v36 = vpop.eup %1873 }
 0x863   :  { %599 = vrot.lane.b32.xlu1 %v1874_v36, %s2140_s15  ;;  %v693_v36 = vrot.slane %v2293_v35, 7 }
 0x872   :  { %v590_v39 = vpop.permute.xlu0 %589 }
 0x873   :  { %v2298_v40 = vadd.f32 %v590_v39, %v574_v38 }
 0x875   :  { %1875 = vtanh.f32 %v2298_v40  ;;  %v694_v30 = vrot.slane %v2298_v40, 7 }
 0x87b   :  { %v1876_v44 = vpop.eup %1875 }
 0x87c   :  { %601 = vrot.lane.b32.xlu2 %v1876_v44, %s2140_s15 }
 0x8d5   :  { %v600_v41 = vpop.permute.xlu1 %599 }
 0x8d6   :  { %v602_v45 = vpop.permute.xlu2 %601  ;;  %v605_v46 = vmul.f32 %v600_v41, %v548_v27 }
 0x8d7   :  { %v606_v43 = vmul.f32 %v602_v45, %v563_v29 }
 0x8d8   :  { %v617_v47 = vrot.slane %v605_v46, 3 }
 0x8d9   :  { %v609_v48 = vrot.slane %v606_v43, 7  ;;  %v618_v49 = vrot.slane %v606_v43, 2 }
 0x8db   :  { %v619_v50 = vsel %vm245_vm9, %v618_v49, %v617_v47  ;;  %v2303_v42 = vsel %vm610_vm8, %v609_v48, %v605_v46 }
 0x8dc   :  { %620 = vrot.lane.b32.xlu0 %v619_v50, %s2141_s3 }
 0x94e   :  { %v621_v51 = vpop.permute.xlu0 %620 }
 0x94f   :  { %1770 = vmatmul.msk.f32.vlgmr.msrb.gmra.mxu2 %vm138_vm11, %v621_v51  ;;  %v1120_v51 = vld [vmem:[#allocation8 + $0x10] sm:$0xff] }
 0x9d2   :  { %v641_v52 = vpop.f32.mrf.mxu2 }
 0x9d3   :  { %v645_v54 = vrot.slane %v641_v52, 4  ;;  %v646_v55 = vrot.slane %v641_v52, 5  ;;  %v2333_v52 = vld [vmem:[#allocation9 + $0x18] sm:$0xff] }
 0x9d4   :  { %1171 = vmatpush.msra.mxu3 %v2333_v52  ;;  %1234 = vmatpush.msra.mxu0 %v2333_v52 }
 0x9d5   :  { %v649_v56 = vadd.f32 %v645_v54, %v2226_v16  ;;  %v650_v58 = vadd.f32 %v646_v55, %v2223_v14  ;;  %v2336_v54 = vld [vmem:[#allocation9 + $0x10] sm:$0xff]  ;;  %v1119_v55 = vld [vmem:[#allocation8 + $0x8] sm:$0xff]  ;;  %1304 = vmatpush.msrb.mxu1 %v2333_v52 }
 0x9d6   :  { %1172 = vmatpush.msra.mxu3 %v2336_v54  ;;  %1235 = vmatpush.msra.mxu0 %v2336_v54 }
 0x9d7   :  { %1877 = vtanh.f32 %v649_v56  ;;  %v1772_v61 = vmul.f32 -1.442695, %v650_v58  ;;  %v1771_v1 = vmul.f32 -1.442695, %v649_v56  ;;  %v2338_v56 = vld [vmem:[#allocation9 + $0x8] sm:$0xff]  ;;  %1305 = vmatpush.msrb.mxu1 %v2336_v54 }
 0x9d8   :  { %1879 = vtanh.f32 %v650_v58  ;;  %1173 = vmatpush.msra.mxu3 %v2338_v56  ;;  %1236 = vmatpush.msra.mxu0 %v2338_v56  ;;  %v2348_v58 = vld [vmem:[#allocation9] sm:$0xff] }
 0x9d9   :  { %1881 = vpow2.f32 %v1772_v61  ;;  %1306 = vmatpush.msrb.mxu1 %v2338_v56 }
 0x9da   :  { %1174 = vmatpush.msra.mxu3 %v2348_v58  ;;  %1237 = vmatpush.msra.mxu0 %v2348_v58 }
 0x9db   :  { %1307 = vmatpush.msrb.mxu1 %v2348_v58 }
 0x9dd   :  { %v1878_v59 = vpop.eup %1877 }
 0x9de   :  { %v1880_v60 = vpop.eup %1879  ;;  %701 = vrot.lane.b32.xlu1 %v1878_v59, %s2140_s15 }
 0x9df   :  { %703 = vrot.lane.b32.xlu2 %v1880_v60, %s2140_s15  ;;  %v1882_v62 = vpop.eup %1881 }
 0x9e0   :  { %v658_v63 = vadd.f32 1.0, %v1882_v62 }
 0x9e2   :  { %1883 = vrcp.f32 %v658_v63  ;;  %v685_v9 = vand.u32 2147483648, %v658_v63  ;;  %vm679_vm12 = vweird.f32 %v658_v63  ;;  %v683_v10 = vand.u32 2147483647, %v658_v63 }
 0x9e3   :  { %1885 = vpow2.f32 %v1771_v1 }
 0x9e4   :  { %v686_v12 = vor.u32 1.1754944e-38, %v685_v9  ;;  %vm684_vm14 = vcmp.eq.f32.partialorder %v683_v10, 8.507059e+37 }
 0x9e8   :  { %v1884_v0 = vpop.eup %1883 }
 0x9e9   :  { %v675_v2 = vmul.f32 %v1884_v0, %v658_v63  ;;  %v1886_v4 = vpop.eup %1885  ;;  %vm680_vm10 = vweird.f32 %v1884_v0 }
 0x9ea   :  { %v657_v6 = vadd.f32 1.0, %v1886_v4  ;;  %vm681_vm13 = vmor %vm679_vm12, %vm680_vm10  ;;  %v2375_v4 = vld [vmem:[%s2542_s6] ss:$0 sm:$0xff] }
 0x9eb   :  { %v676_v3 = vsub.f32 1.0, %v675_v2 }
 0x9ec   :  { %1887 = vrcp.f32 %v657_v6  ;;  %v670_v23 = vand.u32 2147483648, %v657_v6  ;;  %vm664_vm0 = vweird.f32 %v657_v6  ;;  %v668_v24 = vand.u32 2147483647, %v657_v6 }
 0x9ed   :  { %v677_v5 = vmul.f32 %v1884_v0, %v676_v3 }
 0x9ee   :  { %v671_v26 = vor.u32 1.1754944e-38, %v670_v23  ;;  %vm669_vm2 = vcmp.eq.f32.partialorder %v668_v24, 8.507059e+37 }
 0x9ef   :  { %v678_v8 = vadd.f32 %v1884_v0, %v677_v5 }
 0x9f1   :  { %v682_v11 = vsel %vm681_vm13, %v1884_v0, %v678_v8 }
 0x9f2   :  { %v687_v15 = vsel %vm684_vm14, %v686_v12, %v682_v11  ;;  %v1888_v17 = vpop.eup %1887 }
 0x9f3   :  { %v660_v19 = vmul.f32 %v1888_v17, %v657_v6  ;;  %vm665_vm15 = vweird.f32 %v1888_v17  ;;  %v698_v31 = vmul.f32 %v694_v30, %v687_v15 }
 0x9f4   :  { %vm666_vm1 = vmor %vm664_vm0, %vm665_vm15 }
 0x9f5   :  { %v661_v20 = vsub.f32 1.0, %v660_v19 }
 0x9f7   :  { %v662_v21 = vmul.f32 %v1888_v17, %v661_v20 }
 0x9f9   :  { %v663_v22 = vadd.f32 %v1888_v17, %v662_v21 }
 0x9fb   :  { %v667_v25 = vsel %vm666_vm1, %v1888_v17, %v663_v22 }
 0x9fc   :  { %v672_v28 = vsel %vm669_vm2, %v671_v26, %v667_v25 }
 0x9fd   :  { %v697_v37 = vmul.f32 %v693_v36, %v672_v28 }
 0xa39   :  { %v704_v13 = vpop.permute.xlu2 %703 }
 0xa3a   :  { %v708_v18 = vmul.f32 %v704_v13, %v687_v15 }
 0xa3c   :  { %713 = vrot.lane.b32.xlu1 %v708_v18, %s2141_s3 }
 0xa50   :  { %v702_v27 = vpop.permute.xlu1 %701 }
 0xa51   :  { %v707_v29 = vmul.f32 %v702_v27, %v672_v28 }
 0xa53   :  { %711 = vrot.lane.b32.xlu0 %v707_v29, %s2141_s3 }
 0xaae   :  { %v714_v32 = vpop.permute.xlu1 %713 }
 0xaaf   :  { %v2314_v33 = vadd.f32 %v714_v32, %v698_v31 }
 0xab1   :  { %1889 = vtanh.f32 %v2314_v33 }
 0xab7   :  { %v1890_v34 = vpop.eup %1889 }
 0xab8   :  { %725 = vrot.lane.b32.xlu0 %v1890_v34, %s2140_s15 }
 0xac0   :  { %488 = vrot.lane.b32.xlu0 %v2282_v53, %s2141_s3 }
 0xac5   :  { %v712_v38 = vpop.permute.xlu0 %711 }
 0xac6   :  { %v2321_v39 = vadd.f32 %v712_v38, %v697_v37 }
 0xac8   :  { %1891 = vtanh.f32 %v2321_v39 }
 0xace   :  { %v1892_v40 = vpop.eup %1891 }
 0xacf   :  { %723 = vrot.lane.b32.xlu2 %v1892_v40, %s2140_s15 }
 0xad7   :  { %365 = vrot.lane.b32.xlu2 %v2260_v57, %s2141_s3  ;;  %v1121_v57 = vld [vmem:[#allocation8 + $0x18] sm:$0xff] }
 0xad8   :  { %1144 = vmatpush.msra.mxu2 %v1121_v57 }
 0xada   :  { %1145 = vmatpush.msra.mxu2 %v1120_v51 }
 0xadc   :  { %1146 = vmatpush.msra.mxu2 %v1119_v55 }
 0xb29   :  { %v724_v44 = vpop.permute.xlu2 %723 }
 0xb2a   :  { %v726_v41 = vpop.permute.xlu0 %725  ;;  %v729_v45 = vmul.f32 %v724_v44, %v672_v28 }
 0xb2b   :  { %v730_v46 = vmul.f32 %v726_v41, %v687_v15 }
 0xb2c   :  { %v741_v43 = vrot.slane %v729_v45, 4 }
 0xb2d   :  { %v733_v53 = vrot.slane %v730_v46, 7  ;;  %v742_v35 = vrot.slane %v730_v46, 3 }
 0xb2f   :  { %v743_v47 = vsel %vm245_vm9, %v742_v35, %v741_v43  ;;  %v2328_v48 = vsel %vm734_vm3, %v733_v53, %v729_v45 }
 0xb30   :  { %744 = vrot.lane.b32.xlu1 %v743_v47, %s2141_s3 }
 0xb31   :  { %v366_v49 = vpop.permute.xlu2 %365 }
 0xb32   :  { %v489_v50 = vpop.permute.xlu0 %488  ;;  %369 = vst.msk [vmem:[#allocation2 + $0x1] sm:$0x6] %vm368_vm4, %v366_v49 }
 0xb33   :  { %492 = vst.msk [vmem:[#allocation2 + $0x2] sm:$0xc] %vm491_vm5, %v489_v50 }
 0xb38   :  { %612 = vrot.lane.b32.xlu1 %v2303_v42, %s2141_s3  ;;  %v1118_v42 = vld [vmem:[#allocation8] sm:$0xff] }
 0xb39   :  { %1147 = vmatpush.msra.mxu2 %v1118_v42 }
 0xb3b   :  { %1580 = vmatpush.msrb.mxu2 %v2333_v52 }
 0xb3d   :  { %1581 = vmatpush.msrb.mxu2 %v2336_v54 }
 0xb3f   :  { %1582 = vmatpush.msrb.mxu2 %v2338_v56 }
 0xb41   :  { %1583 = vmatpush.msrb.mxu2 %v2348_v58 }
 0xba2   :  { %v745_v59 = vpop.permute.xlu1 %744 }
 0xba3   :  { %1773 = vmatmul.msk.f32.vlgmr.msrb.gmra.mxu3 %vm138_vm11, %v745_v59 }
 0xba4   :  { %1374 = vmatpush.msrb.mxu3 %v2333_v52 }
 0xba6   :  { %1375 = vmatpush.msrb.mxu3 %v2336_v54 }
 0xba8   :  { %1376 = vmatpush.msrb.mxu3 %v2338_v56 }
 0xbaa   :  { %v613_v60 = vpop.permute.xlu1 %612  ;;  %1377 = vmatpush.msrb.mxu3 %v2348_v58 }
 0xbab   :  { %616 = vst.msk [vmem:[#allocation2 + $0x3] sm:$0x18] %vm615_vm6, %v613_v60  ;;  %1175 = vmatmul.f32.vlgmr.msra.gmra.mxu3 %v2139_v7 }
 0xbac   :  { %1650 = vmatpush.msra.mxu3 %v2333_v52 }
 0xbae   :  { %1651 = vmatpush.msra.mxu3 %v2336_v54 }
 0xbb0   :  { %1652 = vmatpush.msra.mxu3 %v2338_v56 }
 0xbb2   :  { %v1116_v61 = vld [vmem:[#allocation2] sm:$0xff]  ;;  %1653 = vmatpush.msra.mxu3 %v2348_v58 }
 0xbb3   :  { %1782 = vmatmul.msk.f32.vlgmr.msra.gmra.mxu2 %vm138_vm11, %v1116_v61 }
 0xc26   :  { %v765_v62 = vpop.f32.mrf.mxu3 }
 0xc27   :  { %v769_v63 = vrot.slane %v765_v62, 3  ;;  %v770_v0 = vrot.slane %v765_v62, 4 }
 0xc29   :  { %v773_v1 = vadd.f32 %v769_v63, %v2226_v16  ;;  %v774_v2 = vadd.f32 %v770_v0, %v2223_v14 }
 0xc2b   :  { %1893 = vtanh.f32 %v773_v1  ;;  %v1774_v11 = vmul.f32 -1.442695, %v773_v1  ;;  %v1775_v17 = vmul.f32 -1.442695, %v774_v2  ;;  %v817_v1 = vrot.slane %v2321_v39, 7 }
 0xc2c   :  { %1895 = vtanh.f32 %v774_v2 }
 0xc2e   :  { %v1176_v6 = vpop.f32.mrf.mxu3 }
 0xc31   :  { %v1894_v7 = vpop.eup %1893 }
 0xc32   :  { %v1896_v3 = vpop.eup %1895  ;;  %825 = vrot.lane.b32.xlu2 %v1894_v7, %s2140_s15 }
 0xc33   :  { %827 = vrot.lane.b32.xlu0 %v1896_v3, %s2140_s15 }
 0xc36   :  { %v1149_v5 = vpop.f32.mrf.mxu2 }
 0xc37   :  { %v2378_v8 = vadd.f32 %v2375_v4, %v1149_v5 }
 0xc39   :  { %v1179_v9 = vadd.f32 %v1176_v6, %v2378_v8  ;;  %v818_v6 = vrot.slane %v2314_v33, 7 }
 0xc3b   :  { %1897 = vtanh.f32 %v1179_v9  ;;  %v1784_v25 = vmul.f32 -1.442695, %v1179_v9 }
 0xc3c   :  { %1899 = vpow2.f32 %v1774_v11 }
 0xc41   :  { %v1898_v10 = vpop.eup %1897 }
 0xc42   :  { %1202 = vrot.lane.b32.xlu1 %v1898_v10, %s2140_s15  ;;  %v1900_v12 = vpop.eup %1899 }
 0xc43   :  { %v781_v13 = vadd.f32 1.0, %v1900_v12 }
 0xc45   :  { %1901 = vrcp.f32 %v781_v13  ;;  %v794_v24 = vand.u32 2147483648, %v781_v13  ;;  %vm788_vm8 = vweird.f32 %v781_v13  ;;  %v792_v26 = vand.u32 2147483647, %v781_v13 }
 0xc46   :  { %1903 = vpow2.f32 %v1775_v17 }
 0xc47   :  { %v795_v28 = vor.u32 1.1754944e-38, %v794_v24  ;;  %vm793_vm12 = vcmp.eq.f32.partialorder %v792_v26, 8.507059e+37 }
 0xc4b   :  { %v1902_v15 = vpop.eup %1901 }
 0xc4c   :  { %v784_v18 = vmul.f32 %v1902_v15, %v781_v13  ;;  %v1904_v21 = vpop.eup %1903  ;;  %vm789_vm7 = vweird.f32 %v1902_v15 }
 0xc4d   :  { %v782_v22 = vadd.f32 1.0, %v1904_v21  ;;  %vm790_vm10 = vmor %vm788_vm8, %vm789_vm7 }
 0xc4e   :  { %v785_v19 = vsub.f32 1.0, %v784_v18 }
 0xc4f   :  { %1905 = vrcp.f32 %v782_v22  ;;  %v809_v45 = vand.u32 2147483648, %v782_v22  ;;  %vm803_vm14 = vweird.f32 %v782_v22  ;;  %v807_v46 = vand.u32 2147483647, %v782_v22 }
 0xc50   :  { %v786_v20 = vmul.f32 %v1902_v15, %v785_v19  ;;  %1907 = vpow2.f32 %v1784_v25 }
 0xc51   :  { %v810_v35 = vor.u32 1.1754944e-38, %v809_v45  ;;  %vm808_vm0 = vcmp.eq.f32.partialorder %v807_v46, 8.507059e+37 }
 0xc52   :  { %v787_v23 = vadd.f32 %v1902_v15, %v786_v20 }
 0xc54   :  { %v791_v27 = vsel %vm790_vm10, %v1902_v15, %v787_v23 }
 0xc55   :  { %v796_v29 = vsel %vm793_vm12, %v795_v28, %v791_v27  ;;  %v1906_v32 = vpop.eup %1905 }
 0xc56   :  { %v1908_v34 = vpop.eup %1907  ;;  %v799_v36 = vmul.f32 %v1906_v32, %v782_v22  ;;  %vm804_vm13 = vweird.f32 %v1906_v32  ;;  %v821_v2 = vmul.f32 %v817_v1, %v796_v29 }
 0xc57   :  { %v1183_v37 = vadd.f32 1.0, %v1908_v34  ;;  %vm805_vm15 = vmor %vm803_vm14, %vm804_vm13 }
 0xc58   :  { %v800_v38 = vsub.f32 1.0, %v799_v36 }
 0xc59   :  { %1909 = vrcp.f32 %v1183_v37  ;;  %v1195_v42 = vand.u32 2147483648, %v1183_v37  ;;  %vm1189_vm2 = vweird.f32 %v1183_v37  ;;  %v1193_v59 = vand.u32 2147483647, %v1183_v37 }
 0xc5a   :  { %v801_v40 = vmul.f32 %v1906_v32, %v800_v38 }
 0xc5b   :  { %v1196_v61 = vor.u32 1.1754944e-38, %v1195_v42  ;;  %vm1194_vm4 = vcmp.eq.f32.partialorder %v1193_v59, 8.507059e+37 }
 0xc5c   :  { %v802_v41 = vadd.f32 %v1906_v32, %v801_v40 }
 0xc5e   :  { %v806_v53 = vsel %vm805_vm15, %v1906_v32, %v802_v41 }
 0xc5f   :  { %v1910_v44 = vpop.eup %1909  ;;  %v811_v47 = vsel %vm808_vm0, %v810_v35, %v806_v53 }
 0xc60   :  { %v1185_v43 = vmul.f32 %v1910_v44, %v1183_v37  ;;  %vm1190_vm1 = vweird.f32 %v1910_v44  ;;  %v822_v9 = vmul.f32 %v818_v6, %v811_v47 }
 0xc61   :  { %vm1191_vm3 = vmor %vm1189_vm2, %vm1190_vm1 }
 0xc62   :  { %v1186_v50 = vsub.f32 1.0, %v1185_v43 }
 0xc64   :  { %v1187_v51 = vmul.f32 %v1910_v44, %v1186_v50 }
 0xc66   :  { %v1188_v55 = vadd.f32 %v1910_v44, %v1187_v51 }
 0xc68   :  { %v1192_v60 = vsel %vm1191_vm3, %v1910_v44, %v1188_v55  ;;  %vm982_vm3 = vcmask 1047559  }
 0xc69   :  { %v1197_v63 = vsel %vm1194_vm4, %v1196_v61, %v1192_v60 }
 0xc6a   :  { %v1200_v39 = vmul.f32 0.0, %v1197_v63 }
 0xc8c   :  { %v826_v30 = vpop.permute.xlu2 %825 }
 0xc8d   :  { %v831_v31 = vmul.f32 %v826_v30, %v796_v29 }
 0xc8f   :  { %835 = vrot.lane.b32.xlu2 %v831_v31, %s2141_s3 }
 0xca5   :  { %v828_v49 = vpop.permute.xlu0 %827 }
 0xca6   :  { %v832_v57 = vmul.f32 %v828_v49, %v811_v47 }
 0xca8   :  { %837 = vrot.lane.b32.xlu0 %v832_v57, %s2141_s3 }
 0xcb4   :  { %v1203_v62 = vpop.permute.xlu1 %1202 }
 0xcb5   :  { %v1205_v0 = vmul.f32 %v1203_v62, %v1197_v63 }
 0xcb7   :  { %1207 = vrot.lane.b32.xlu1 %v1205_v0, %s2141_s3 }
 0xce9   :  { %v836_v7 = vpop.permute.xlu2 %835 }
 0xcea   :  { %v2386_v3 = vadd.f32 %v836_v7, %v821_v2 }
 0xcec   :  { %1911 = vtanh.f32 %v2386_v3 }
 0xcf2   :  { %v1912_v5 = vpop.eup %1911 }
 0xcf3   :  { %847 = vrot.lane.b32.xlu2 %v1912_v5, %s2140_s15 }
 0xd1a   :  { %v838_v10 = vpop.permute.xlu0 %837 }
 0xd1b   :  { %v2391_v11 = vadd.f32 %v838_v10, %v822_v9 }
 0xd1d   :  { %1913 = vtanh.f32 %v2391_v11 }
 0xd23   :  { %v1914_v12 = vpop.eup %1913 }
 0xd24   :  { %849 = vrot.lane.b32.xlu0 %v1914_v12, %s2140_s15 }
 0xd29   :  { %v1208_v13 = vpop.permute.xlu1 %1207 }
 0xd2a   :  { %v2395_v15 = vadd.f32 %v1208_v13, %v1200_v39 }
 0xd2c   :  { %1915 = vtanh.f32 %v2395_v15 }
 0xd32   :  { %v1916_v17 = vpop.eup %1915 }
 0xd33   :  { %1213 = vrot.lane.b32.xlu1 %v1916_v17, %s2140_s15 }
 0xd4d   :  { %v848_v18 = vpop.permute.xlu2 %847 }
 0xd4e   :  { %v2399_v33 = vmul.f32 %v848_v18, %v796_v29 }
 0xd50   :  { %v865_v21 = vrot.slane %v2399_v33, 5 }
 0xd96   :  { %v850_v19 = vpop.permute.xlu0 %849 }
 0xd97   :  { %v2401_v20 = vmul.f32 %v850_v19, %v811_v47 }
 0xd99   :  { %v866_v22 = vrot.slane %v2401_v20, 4 }
 0xd9b   :  { %v867_v23 = vsel %vm245_vm9, %v866_v22, %v865_v21 }
 0xd9c   :  { %868 = vrot.lane.b32.xlu2 %v867_v23, %s2141_s3 }
 0xda5   :  { %v1214_v24 = vpop.permute.xlu1 %1213 }
 0xda6   :  { %v1216_v25 = vmul.f32 %v1214_v24, %v1197_v63 }
 0xda8   :  { %1218 = vrot.lane.b32.xlu0 %v1216_v25, %s2141_s3 }
 0xdf6   :  { %v869_v26 = vpop.permute.xlu2 %868 }
 0xdf7   :  { %1776 = vmatmul.msk.f32.vlgmr.msrb.gmra.mxu0 %vm138_vm11, %v869_v26 }
 0xdf8   :  { %1444 = vmatpush.msrb.mxu0 %v2333_v52 }
 0xdfa   :  { %1445 = vmatpush.msrb.mxu0 %v2336_v54 }
 0xdfc   :  { %1446 = vmatpush.msrb.mxu0 %v2338_v56 }
 0xdfe   :  { %1447 = vmatpush.msrb.mxu0 %v2348_v58 }
 0xe1a   :  { %v1219_v27 = vpop.permute.xlu0 %1218 }
 0xe1b   :  { %1785 = vmatmul.msk.f32.vlgmr.msra.gmra.mxu0 %vm138_vm11, %v1219_v27 }
 0xe74   :  { %v889_v28 = vpop.f32.mrf.mxu0 }
 0xe75   :  { %v893_v29 = vrot.slane %v889_v28, 2  ;;  %v894_v30 = vrot.slane %v889_v28, 3 }
 0xe77   :  { %v897_v31 = vadd.f32 %v893_v29, %v2226_v16  ;;  %v898_v32 = vadd.f32 %v894_v30, %v2223_v14 }
 0xe79   :  { %1917 = vtanh.f32 %v897_v31  ;;  %v1778_v41 = vmul.f32 -1.442695, %v898_v32  ;;  %v1777_v53 = vmul.f32 -1.442695, %v897_v31 }
 0xe7a   :  { %1919 = vtanh.f32 %v898_v32 }
 0xe7f   :  { %v1918_v34 = vpop.eup %1917 }
 0xe80   :  { %v1920_v36 = vpop.eup %1919  ;;  %949 = vrot.lane.b32.xlu1 %v1918_v34, %s2140_s15 }
 0xe81   :  { %951 = vrot.lane.b32.xlu2 %v1920_v36, %s2140_s15  ;;  %v942_v36 = vrot.slane %v2391_v11, 7  ;;  %v1267_v11 = vrot.slane %v2395_v15, 6 }
 0xe98   :  { %v1239_v37 = vpop.f32.mrf.mxu0 }
 0xe99   :  { %v1243_v38 = vrot.slane %v1239_v37, 6 }
 0xe9b   :  { %v1245_v40 = vadd.f32 %v1243_v38, %v2378_v8 }
 0xe9d   :  { %1921 = vtanh.f32 %v1245_v40  ;;  %v1786_v5 = vmul.f32 -1.442695, %v1245_v40 }
 0xe9e   :  { %1923 = vpow2.f32 %v1778_v41  ;;  %v941_v41 = vrot.slane %v2386_v3, 7 }
 0xea3   :  { %v1922_v44 = vpop.eup %1921 }
 0xea4   :  { %1271 = vrot.lane.b32.xlu0 %v1922_v44, %s2140_s15  ;;  %v1924_v45 = vpop.eup %1923 }
 0xea5   :  { %v906_v46 = vadd.f32 1.0, %v1924_v45 }
 0xea7   :  { %1925 = vrcp.f32 %v906_v46  ;;  %v933_v55 = vand.u32 2147483648, %v906_v46  ;;  %vm927_vm6 = vweird.f32 %v906_v46  ;;  %v931_v42 = vand.u32 2147483647, %v906_v46 }
 0xea8   :  { %1927 = vpow2.f32 %v1777_v53 }
 0xea9   :  { %v934_v60 = vor.u32 1.1754944e-38, %v933_v55  ;;  %vm932_vm8 = vcmp.eq.f32.partialorder %v931_v42, 8.507059e+37 }
 0xead   :  { %v1926_v43 = vpop.eup %1925 }
 0xeae   :  { %v923_v35 = vmul.f32 %v1926_v43, %v906_v46  ;;  %v1928_v49 = vpop.eup %1927  ;;  %vm928_vm5 = vweird.f32 %v1926_v43 }
 0xeaf   :  { %v905_v57 = vadd.f32 1.0, %v1928_v49  ;;  %vm929_vm7 = vmor %vm927_vm6, %vm928_vm5 }
 0xeb0   :  { %v924_v47 = vsub.f32 1.0, %v923_v35 }
 0xeb1   :  { %1929 = vrcp.f32 %v905_v57  ;;  %v918_v9 = vand.u32 2147483648, %v905_v57  ;;  %vm912_vm12 = vweird.f32 %v905_v57  ;;  %v916_v10 = vand.u32 2147483647, %v905_v57 }
 0xeb2   :  { %v925_v50 = vmul.f32 %v1926_v43, %v924_v47  ;;  %1931 = vpow2.f32 %v1786_v5 }
 0xeb3   :  { %v919_v39 = vor.u32 1.1754944e-38, %v918_v9  ;;  %vm917_vm14 = vcmp.eq.f32.partialorder %v916_v10, 8.507059e+37 }
 0xeb4   :  { %v926_v51 = vadd.f32 %v1926_v43, %v925_v50 }
 0xeb6   :  { %v930_v59 = vsel %vm929_vm7, %v1926_v43, %v926_v51 }
 0xeb7   :  { %v2420_v62 = vsel %vm932_vm8, %v934_v60, %v930_v59  ;;  %v1930_v63 = vpop.eup %1929 }
 0xeb8   :  { %v908_v1 = vmul.f32 %v1930_v63, %v905_v57  ;;  %vm913_vm10 = vweird.f32 %v1930_v63  ;;  %v1932_v18 = vpop.eup %1931  ;;  %v946_v37 = vmul.f32 %v942_v36, %v2420_v62 }
 0xeb9   :  { %vm914_vm13 = vmor %vm912_vm12, %vm913_vm10  ;;  %v1249_v21 = vadd.f32 1.0, %v1932_v18 }
 0xeba   :  { %v909_v2 = vsub.f32 1.0, %v908_v1 }
 0xebb   :  { %1933 = vrcp.f32 %v1249_v21  ;;  %v1261_v27 = vand.u32 2147483648, %v1249_v21  ;;  %vm1255_vm0 = vweird.f32 %v1249_v21  ;;  %v1259_v28 = vand.u32 2147483647, %v1249_v21 }
 0xebc   :  { %v910_v7 = vmul.f32 %v1930_v63, %v909_v2 }
 0xebd   :  { %v1262_v30 = vor.u32 1.1754944e-38, %v1261_v27  ;;  %vm1260_vm2 = vcmp.eq.f32.partialorder %v1259_v28, 8.507059e+37 }
 0xebe   :  { %v911_v6 = vadd.f32 %v1930_v63, %v910_v7 }
 0xec0   :  { %v915_v12 = vsel %vm914_vm13, %v1930_v63, %v911_v6 }
 0xec1   :  { %v920_v13 = vsel %vm917_vm14, %v919_v39, %v915_v12  ;;  %v1934_v22 = vpop.eup %1933 }
 0xec2   :  { %v1251_v23 = vmul.f32 %v1934_v22, %v1249_v21  ;;  %vm1256_vm15 = vweird.f32 %v1934_v22  ;;  %v945_v45 = vmul.f32 %v941_v41, %v920_v13 }
 0xec3   :  { %vm1257_vm1 = vmor %vm1255_vm0, %vm1256_vm15 }
 0xec4   :  { %v1252_v24 = vsub.f32 1.0, %v1251_v23 }
 0xec6   :  { %v1253_v25 = vmul.f32 %v1934_v22, %v1252_v24 }
 0xec8   :  { %v1254_v26 = vadd.f32 %v1934_v22, %v1253_v25 }
 0xeca   :  { %v1258_v29 = vsel %vm1257_vm1, %v1934_v22, %v1254_v26  ;;  %vm858_vm1 = vcmask 1046534  }
 0xecb   :  { %v1263_v32 = vsel %vm1260_vm2, %v1262_v30, %v1258_v29  ;;  %vm739_vm2 = vcmask 259076  }
 0xecc   :  { %v1269_v35 = vmul.f32 %v1267_v11, %v1263_v32 }
 0xedb   :  { %v952_v61 = vpop.permute.xlu2 %951 }
 0xedc   :  { %v956_v0 = vmul.f32 %v952_v61, %v2420_v62 }
 0xede   :  { %961 = vrot.lane.b32.xlu2 %v956_v0, %s2141_s3 }
 0xef2   :  { %v950_v17 = vpop.permute.xlu1 %949 }
 0xef3   :  { %v955_v19 = vmul.f32 %v950_v17, %v920_v13 }
 0xef5   :  { %959 = vrot.lane.b32.xlu1 %v955_v19, %s2141_s3 }
 0xf16   :  { %v1272_v31 = vpop.permute.xlu0 %1271 }
 0xf17   :  { %v1274_v34 = vmul.f32 %v1272_v31, %v1263_v32 }
 0xf19   :  { %1276 = vrot.lane.b32.xlu0 %v1274_v34, %s2141_s3 }
 0xf38   :  { %v962_v38 = vpop.permute.xlu2 %961 }
 0xf39   :  { %v2428_v40 = vadd.f32 %v962_v38, %v946_v37 }
 0xf3b   :  { %1935 = vtanh.f32 %v2428_v40 }
 0xf41   :  { %v1936_v44 = vpop.eup %1935 }
 0xf42   :  { %973 = vrot.lane.b32.xlu2 %v1936_v44, %s2140_s15 }
 0xf67   :  { %v960_v46 = vpop.permute.xlu1 %959 }
 0xf68   :  { %v2433_v43 = vadd.f32 %v960_v46, %v945_v45 }
 0xf6a   :  { %1937 = vtanh.f32 %v2433_v43 }
 0xf70   :  { %v1938_v53 = vpop.eup %1937 }
 0xf71   :  { %971 = vrot.lane.b32.xlu1 %v1938_v53, %s2140_s15 }
 0xf8b   :  { %v1277_v47 = vpop.permute.xlu0 %1276 }
 0xf8c   :  { %v2438_v49 = vadd.f32 %v1277_v47, %v1269_v35 }
 0xf8e   :  { %1939 = vtanh.f32 %v2438_v49  ;;  %v1337_v37 = vrot.slane %v2438_v49, 6 }
 0xf94   :  { %v1940_v50 = vpop.eup %1939 }
 0xf95   :  { %1282 = vrot.lane.b32.xlu0 %v1940_v50, %s2140_s15 }
 0xf9c   :  { %v974_v3 = vpop.permute.xlu2 %973 }
 0xf9d   :  { %v978_v57 = vmul.f32 %v974_v3, %v2420_v62 }
 0xf9f   :  { %v981_v55 = vrot.slane %v978_v57, 7  ;;  %v990_v59 = vrot.slane %v978_v57, 5 }
 0xfe3   :  { %v972_v51 = vpop.permute.xlu1 %971 }
 0xfe4   :  { %v977_v42 = vmul.f32 %v972_v51, %v920_v13 }
 0xfe6   :  { %v989_v60 = vrot.slane %v977_v42, 6  ;;  %v2443_v61 = vsel %vm982_vm3, %v981_v55, %v977_v42  ;;  %vm863_vm3 = vcmask 260101  }
 0xfe8   :  { %v991_v15 = vsel %vm245_vm9, %v990_v59, %v989_v60 }
 0xfe9   :  { %992 = vrot.lane.b32.xlu1 %v991_v15, %s2141_s3 }
0x1007   :  { %v1283_v63 = vpop.permute.xlu0 %1282 }
0x1008   :  { %v1285_v0 = vmul.f32 %v1283_v63, %v1263_v32 }
0x100a   :  { %v1287_v1 = vrot.slane %v1285_v0, 2 }
0x100c   :  { %1288 = vrot.lane.b32.xlu2 %v1287_v1, %s2141_s3 }
0x105b   :  { %v993_v2 = vpop.permute.xlu1 %992 }
0x105c   :  { %1779 = vmatmul.msk.f32.vlgmr.msra.gmra.mxu1 %vm138_vm11, %v993_v2 }
0x105d   :  { %1510 = vmatpush.msra.mxu1 %v2333_v52 }
0x105f   :  { %1511 = vmatpush.msra.mxu1 %v2336_v54 }
0x1061   :  { %1512 = vmatpush.msra.mxu1 %v2338_v56 }
0x1063   :  { %1513 = vmatpush.msra.mxu1 %v2348_v58 }
0x1066   :  { %v1289_v62 = vpop.permute.xlu2 %1288 }
0x1067   :  { %1787 = vmatmul.msk.f32.vlgmr.msrb.gmra.mxu1 %vm138_vm11, %v1289_v62 }
0x10d9   :  { %v1013_v7 = vpop.f32.mrf.mxu1 }
0x10da   :  { %v1018_v21 = vrot.slane %v1013_v7, 2  ;;  %v1017_v53 = vrot.slane %v1013_v7, 1 }
0x10dc   :  { %v1022_v24 = vadd.f32 %v1018_v21, %v2223_v14  ;;  %v1021_v50 = vadd.f32 %v1017_v53, %v2226_v16 }
0x10de   :  { %v1781_v29 = vmul.f32 -1.442695, %v1022_v24  ;;  %v1780_v42 = vmul.f32 -1.442695, %v1021_v50 }
0x10e4   :  { %v1309_v5 = vpop.f32.mrf.mxu1 }
0x10e5   :  { %v1313_v6 = vrot.slane %v1309_v5, 4 }
0x10e7   :  { %v1315_v9 = vadd.f32 %v1313_v6, %v2378_v8 }
0x10e9   :  { %1941 = vtanh.f32 %v1315_v9  ;;  %v1788_v12 = vmul.f32 -1.442695, %v1315_v9 }
0x10eb   :  { %1943 = vpow2.f32 %v1788_v12 }
0x10ef   :  { %v1942_v10 = vpop.eup %1941 }
0x10f0   :  { %1341 = vrot.lane.b32.xlu0 %v1942_v10, %s2140_s15 }
0x10f1   :  { %v1944_v52 = vpop.eup %1943 }
0x10f2   :  { %v1319_v54 = vadd.f32 1.0, %v1944_v52 }
0x10f4   :  { %1945 = vrcp.f32 %v1319_v54  ;;  %v1331_v18 = vand.u32 2147483648, %v1319_v54  ;;  %vm1325_vm4 = vweird.f32 %v1319_v54  ;;  %v1329_v19 = vand.u32 2147483647, %v1319_v54 }
0x10f5   :  { %1947 = vtanh.f32 %v1022_v24 }
0x10f6   :  { %v1332_v23 = vor.u32 1.1754944e-38, %v1331_v18  ;;  %vm1330_vm6 = vcmp.eq.f32.partialorder %v1329_v19, 8.507059e+37  ;;  %1949 = vpow2.f32 %v1781_v29  ;;  %v1065_v18 = vrot.slane %v2433_v43, 7 }
0x10fa   :  { %v1946_v56 = vpop.eup %1945 }
0x10fb   :  { %v1321_v39 = vmul.f32 %v1946_v56, %v1319_v54  ;;  %vm1326_vm9 = vweird.f32 %v1946_v56  ;;  %v1948_v28 = vpop.eup %1947 }
0x10fc   :  { %vm1327_vm5 = vmor %vm1325_vm4, %vm1326_vm9  ;;  %v1950_v30 = vpop.eup %1949  ;;  %vm1114_vm9 = vcmask 253952   ;;  %vm1112_vm4 = vcmask 261127  }
0x10fd   :  { %v1322_v58 = vsub.f32 1.0, %v1321_v39  ;;  %v1030_v31 = vadd.f32 1.0, %v1950_v30 }
0x10ff   :  { %v1323_v13 = vmul.f32 %v1946_v56, %v1322_v58  ;;  %1951 = vrcp.f32 %v1030_v31  ;;  %v1057_v46 = vand.u32 2147483648, %v1030_v31  ;;  %vm1051_vm8 = vweird.f32 %v1030_v31 }
0x1100   :  { %v1055_v11 = vand.u32 2147483647, %v1030_v31 }
0x1101   :  { %v1324_v17 = vadd.f32 %v1946_v56, %v1323_v13  ;;  %v1058_v47 = vor.u32 1.1754944e-38, %v1057_v46 }
0x1102   :  { %vm1056_vm12 = vcmp.eq.f32.partialorder %v1055_v11, 8.507059e+37 }
0x1103   :  { %v1328_v22 = vsel %vm1327_vm5, %v1946_v56, %v1324_v17  ;;  %v1066_v56 = vrot.slane %v2428_v40, 7  ;;  %v857_v40 = vrot.slane %v2401_v20, 7 }
0x1104   :  { %v1333_v26 = vsel %vm1330_vm6, %v1332_v23, %v1328_v22 }
0x1105   :  { %v1952_v32 = vpop.eup %1951  ;;  %v1339_v38 = vmul.f32 %v1337_v37, %v1333_v26  ;;  %v859_v24 = vsel %vm858_vm1, %v857_v40, %v2399_v33 }
0x1106   :  { %v1047_v34 = vmul.f32 %v1952_v32, %v1030_v31  ;;  %vm1052_vm7 = vweird.f32 %v1952_v32 }
0x1107   :  { %vm1053_vm10 = vmor %vm1051_vm8, %vm1052_vm7 }
0x1108   :  { %v1048_v36 = vsub.f32 1.0, %v1047_v34 }
0x110a   :  { %v1049_v14 = vmul.f32 %v1952_v32, %v1048_v36 }
0x110c   :  { %v1050_v45 = vadd.f32 %v1952_v32, %v1049_v14 }
0x110e   :  { %v1054_v35 = vsel %vm1053_vm10, %v1952_v32, %v1050_v45  ;;  %vm987_vm10 = vcmask 261126  }
0x110f   :  { %v1059_v3 = vsel %vm1056_vm12, %v1058_v47, %v1054_v35 }
0x1110   :  { %v1070_v39 = vmul.f32 %v1066_v56, %v1059_v3 }
0x1162   :  { %v1342_v25 = vpop.permute.xlu0 %1341 }
0x1163   :  { %v1344_v27 = vmul.f32 %v1342_v25, %v1333_v26 }
0x1165   :  { %1346 = vrot.lane.b32.xlu1 %v1344_v27, %s2141_s3 }
0x116d   :  { %1075 = vrot.lane.b32.xlu1 %v1948_v28, %s2140_s15 }
0x11d7   :  { %v1347_v44 = vpop.permute.xlu1 %1346 }
0x11d8   :  { %v2460_v41 = vadd.f32 %v1347_v44, %v1339_v38 }
0x11da   :  { %1953 = vtanh.f32 %v2460_v41 }
0x11db   :  { %1955 = vtanh.f32 %v1021_v50 }
0x11dc   :  { %1957 = vpow2.f32 %v1780_v42 }
0x11df   :  { %v1076_v49 = vpop.permute.xlu1 %1075 }
0x11e0   :  { %v1954_v57 = vpop.eup %1953  ;;  %v1080_v51 = vmul.f32 %v1076_v49, %v1059_v3 }
0x11e1   :  { %1352 = vrot.lane.b32.xlu2 %v1954_v57, %s2140_s15  ;;  %v1956_v55 = vpop.eup %1955 }
0x11e2   :  { %1085 = vrot.lane.b32.xlu1 %v1080_v51, %s2141_s3  ;;  %v1958_v59 = vpop.eup %1957  ;;  %v1407_v51 = vrot.slane %v2460_v41, 6 }
0x11e3   :  { %v1029_v60 = vadd.f32 1.0, %v1958_v59 }
0x11e5   :  { %1959 = vrcp.f32 %v1029_v60  ;;  %v1042_v7 = vand.u32 2147483648, %v1029_v60  ;;  %vm1036_vm14 = vweird.f32 %v1029_v60  ;;  %v1040_v6 = vand.u32 2147483647, %v1029_v60 }
0x11e7   :  { %v1043_v10 = vor.u32 1.1754944e-38, %v1042_v7  ;;  %vm1041_vm0 = vcmp.eq.f32.partialorder %v1040_v6, 8.507059e+37 }
0x11e9   :  { %1073 = vrot.lane.b32.xlu2 %v1956_v55, %s2140_s15 }
0x11eb   :  { %v1960_v15 = vpop.eup %1959 }
0x11ec   :  { %v1032_v16 = vmul.f32 %v1960_v15, %v1029_v60  ;;  %vm1037_vm13 = vweird.f32 %v1960_v15 }
0x11ed   :  { %vm1038_vm15 = vmor %vm1036_vm14, %vm1037_vm13 }
0x11ee   :  { %v1033_v63 = vsub.f32 1.0, %v1032_v16 }
0x11f0   :  { %v1034_v0 = vmul.f32 %v1960_v15, %v1033_v63 }
0x11f2   :  { %v1035_v62 = vadd.f32 %v1960_v15, %v1034_v0 }
0x11f4   :  { %v1039_v9 = vsel %vm1038_vm15, %v1960_v15, %v1035_v62 }
0x11f5   :  { %v1044_v52 = vsel %vm1041_vm0, %v1043_v10, %v1039_v9 }
0x11f6   :  { %v1069_v19 = vmul.f32 %v1065_v18, %v1044_v52 }
0x123b   :  { %v1353_v1 = vpop.permute.xlu2 %1352 }
0x123c   :  { %v1355_v2 = vmul.f32 %v1353_v1, %v1333_v26 }
0x123e   :  { %v1357_v5 = vrot.slane %v1355_v2, 4 }
0x1240   :  { %1358 = vrot.lane.b32.xlu0 %v1357_v5, %s2141_s3 }
0x1243   :  { %v1074_v12 = vpop.permute.xlu2 %1073 }
0x1244   :  { %v1079_v54 = vmul.f32 %v1074_v12, %v1044_v52 }
0x1246   :  { %1083 = vrot.lane.b32.xlu2 %v1079_v54, %s2141_s3 }
0x1254   :  { %v1086_v58 = vpop.permute.xlu1 %1085 }
0x1255   :  { %v1090_v13 = vadd.f32 %v1086_v58, %v1070_v39 }
0x1257   :  { %1961 = vtanh.f32 %v1090_v13 }
0x125d   :  { %v1962_v17 = vpop.eup %1961 }
0x125e   :  { %1097 = vrot.lane.b32.xlu1 %v1962_v17, %s2140_s15 }
0x1266   :  { %736 = vrot.lane.b32.xlu1 %v2328_v48, %s2141_s3 }
0x12a0   :  { %v1084_v21 = vpop.permute.xlu2 %1083 }
0x12a1   :  { %v1089_v22 = vadd.f32 %v1084_v21, %v1069_v19 }
0x12a3   :  { %1963 = vtanh.f32 %v1089_v22 }
0x12a9   :  { %v1964_v23 = vpop.eup %1963 }
0x12aa   :  { %1095 = vrot.lane.b32.xlu2 %v1964_v23, %s2140_s15 }
0x12b2   :  { %v1359_v25 = vpop.permute.xlu0 %1358  ;;  %860 = vrot.lane.b32.xlu2 %v859_v24, %s2141_s3 }
0x12b3   :  { %1789 = vmatmul.msk.f32.vlgmr.msrb.gmra.mxu3 %vm138_vm11, %v1359_v25 }
0x12d0   :  { %v1098_v48 = vpop.permute.xlu1 %1097 }
0x12d1   :  { %v1102_v26 = vmul.f32 %v1098_v48, %v1059_v3 }
0x12d3   :  { %v1105_v43 = vrot.slane %v1102_v26, 7 }
0x12d5   :  { %1108 = vrot.lane.b32.xlu2 %v1105_v43, %s2141_s3 }
0x12d8   :  { %v737_v27 = vpop.permute.xlu1 %736 }
0x12d9   :  { %740 = vst.msk [vmem:[#allocation2 + $0x4] sm:$0x30] %vm739_vm2, %v737_v27 }
0x1304   :  { %v1096_v28 = vpop.permute.xlu2 %1095 }
0x1305   :  { %v1101_v29 = vmul.f32 %v1096_v28, %v1044_v52 }
0x1307   :  { %1106 = vrot.lane.b32.xlu1 %v1101_v29, %s2141_s3 }
0x130c   :  { %v861_v20 = vpop.permute.xlu2 %860 }
0x130d   :  { %864 = vst.msk [vmem:[#allocation2 + $0x5] sm:$0x60] %vm863_vm3, %v861_v20 }
0x132f   :  { %v1109_v33 = vpop.permute.xlu2 %1108 }
0x1330   :  { %1115 = vst.msk [vmem:[#allocation2 + $0xf] sm:$0x1] %vm1114_vm9, %v1109_v33 }
0x1336   :  { %v1379_v30 = vpop.f32.mrf.mxu3 }
0x1337   :  { %v1383_v31 = vrot.slane %v1379_v30, 2 }
0x1339   :  { %v1385_v32 = vadd.f32 %v1383_v31, %v2378_v8 }
0x133b   :  { %1965 = vtanh.f32 %v1385_v32  ;;  %v1790_v37 = vmul.f32 -1.442695, %v1385_v32 }
0x133d   :  { %1967 = vpow2.f32 %v1790_v37 }
0x1341   :  { %v1966_v34 = vpop.eup %1965 }
0x1342   :  { %1411 = vrot.lane.b32.xlu0 %v1966_v34, %s2140_s15 }
0x1343   :  { %v1968_v14 = vpop.eup %1967 }
0x1344   :  { %v1389_v38 = vadd.f32 1.0, %v1968_v14 }
0x1346   :  { %1969 = vrcp.f32 %v1389_v38  ;;  %v1401_v35 = vand.u32 2147483648, %v1389_v38  ;;  %vm1395_vm6 = vweird.f32 %v1389_v38  ;;  %v1399_v8 = vand.u32 2147483647, %v1389_v38 }
0x1348   :  { %v1402_v50 = vor.u32 1.1754944e-38, %v1401_v35  ;;  %vm1400_vm8 = vcmp.eq.f32.partialorder %v1399_v8, 8.507059e+37 }
0x134c   :  { %v1970_v44 = vpop.eup %1969 }
0x134d   :  { %v1391_v45 = vmul.f32 %v1970_v44, %v1389_v38  ;;  %vm1396_vm5 = vweird.f32 %v1970_v44 }
0x134e   :  { %vm1397_vm7 = vmor %vm1395_vm6, %vm1396_vm5 }
0x134f   :  { %v1392_v46 = vsub.f32 1.0, %v1391_v45 }
0x1351   :  { %v1393_v53 = vmul.f32 %v1970_v44, %v1392_v46 }
0x1353   :  { %v1394_v11 = vadd.f32 %v1970_v44, %v1393_v53 }
0x1355   :  { %v1398_v47 = vsel %vm1397_vm7, %v1970_v44, %v1394_v11 }
0x1356   :  { %v1403_v3 = vsel %vm1400_vm8, %v1402_v50, %v1398_v47 }
0x1357   :  { %v1409_v55 = vmul.f32 %v1407_v51, %v1403_v3 }
0x1379   :  { %v1107_v36 = vpop.permute.xlu1 %1106 }
0x137a   :  { %1113 = vst.msk [vmem:[#allocation2 + $0x7] sm:$0x80] %vm1112_vm4, %v1107_v36 }
0x13b4   :  { %v1412_v49 = vpop.permute.xlu0 %1411 }
0x13b5   :  { %v1414_v57 = vmul.f32 %v1412_v49, %v1403_v3 }
0x13b7   :  { %1416 = vrot.lane.b32.xlu0 %v1414_v57, %s2141_s3 }
0x1429   :  { %v1417_v42 = vpop.permute.xlu0 %1416 }
0x142a   :  { %v1419_v59 = vadd.f32 %v1417_v42, %v1409_v55 }
0x142c   :  { %1971 = vtanh.f32 %v1419_v59  ;;  %v1474_v22 = vrot.slane %v1419_v59, 6 }
0x1432   :  { %v1972_v60 = vpop.eup %1971 }
0x1433   :  { %1422 = vrot.lane.b32.xlu0 %v1972_v60, %s2140_s15 }
0x143b   :  { %984 = vrot.lane.b32.xlu0 %v2443_v61, %s2141_s3 }
0x14a5   :  { %v1423_v15 = vpop.permute.xlu0 %1422 }
0x14a6   :  { %v1425_v16 = vmul.f32 %v1423_v15, %v1403_v3 }
0x14a8   :  { %v1427_v63 = vrot.slane %v1425_v16, 6 }
0x14aa   :  { %1428 = vrot.lane.b32.xlu0 %v1427_v63, %s2141_s3 }
0x14ad   :  { %v985_v0 = vpop.permute.xlu0 %984 }
0x14ae   :  { %988 = vst.msk [vmem:[#allocation2 + $0x6] sm:$0xc0] %vm987_vm10, %v985_v0 }
0x14b5   :  { %v1117_v1 = vld [vmem:[#allocation2 + $0x8] sm:$0xff] }
0x14b6   :  { %1783 = vmatmul.msk.f32.gmra.mxu2 %vm138_vm11, %v1117_v1 }
0x151c   :  { %v1429_v41 = vpop.permute.xlu0 %1428 }
0x151d   :  { %1791 = vmatmul.msk.f32.vlgmr.msrb.gmra.mxu0 %vm138_vm11, %v1429_v41 }
0x1539   :  { %v1152_v2 = vpop.f32.mrf.mxu2 }
0x153a   :  { %v2492_v62 = vadd.f32 %v2375_v4, %v1152_v2 }
0x159a   :  { %v1449_v7 = vpop.f32.mrf.mxu0 }
0x159b   :  { %v1452_v61 = vadd.f32 %v1449_v7, %v2492_v62 }
0x159d   :  { %1973 = vtanh.f32 %v1452_v61  ;;  %v1792_v6 = vmul.f32 -1.442695, %v1452_v61 }
0x159f   :  { %1975 = vpow2.f32 %v1792_v6 }
0x15a3   :  { %v1974_v5 = vpop.eup %1973 }
0x15a4   :  { %1478 = vrot.lane.b32.xlu1 %v1974_v5, %s2140_s15 }
0x15a5   :  { %v1976_v9 = vpop.eup %1975 }
0x15a6   :  { %v1456_v10 = vadd.f32 1.0, %v1976_v9 }
0x15a8   :  { %1977 = vrcp.f32 %v1456_v10  ;;  %v1468_v4 = vand.u32 2147483648, %v1456_v10  ;;  %vm1462_vm13 = vweird.f32 %v1456_v10  ;;  %v1466_v58 = vand.u32 2147483647, %v1456_v10 }
0x15aa   :  { %v1469_v17 = vor.u32 1.1754944e-38, %v1468_v4  ;;  %vm1467_vm15 = vcmp.eq.f32.partialorder %v1466_v58, 8.507059e+37 }
0x15ae   :  { %v1978_v12 = vpop.eup %1977 }
0x15af   :  { %v1458_v52 = vmul.f32 %v1978_v12, %v1456_v10  ;;  %vm1463_vm12 = vweird.f32 %v1978_v12 }
0x15b0   :  { %vm1464_vm14 = vmor %vm1462_vm13, %vm1463_vm12  ;;  %vm1736_vm13 = vcmask 33792  }
0x15b1   :  { %v1459_v54 = vsub.f32 1.0, %v1458_v52 }
0x15b3   :  { %v1460_v56 = vmul.f32 %v1978_v12, %v1459_v54 }
0x15b5   :  { %v1461_v39 = vadd.f32 %v1978_v12, %v1460_v56 }
0x15b7   :  { %v1465_v13 = vsel %vm1464_vm14, %v1978_v12, %v1461_v39 }
0x15b8   :  { %v1470_v19 = vsel %vm1467_vm15, %v1469_v17, %v1465_v13 }
0x15b9   :  { %v1476_v23 = vmul.f32 %v1474_v22, %v1470_v19 }
0x1616   :  { %v1479_v18 = vpop.permute.xlu1 %1478 }
0x1617   :  { %v1481_v21 = vmul.f32 %v1479_v18, %v1470_v19 }
0x1619   :  { %1483 = vrot.lane.b32.xlu2 %v1481_v21, %s2141_s3 }
0x1673   :  { %v1484_v40 = vpop.permute.xlu2 %1483 }
0x1674   :  { %v1486_v24 = vadd.f32 %v1484_v40, %v1476_v23 }
0x1676   :  { %1979 = vtanh.f32 %v1486_v24  ;;  %v1543_v8 = vrot.slane %v1486_v24, 6 }
0x167c   :  { %v1980_v25 = vpop.eup %1979 }
0x167d   :  { %1489 = vrot.lane.b32.xlu0 %v1980_v25, %s2140_s15 }
0x16ef   :  { %v1490_v48 = vpop.permute.xlu0 %1489 }
0x16f0   :  { %v1492_v26 = vmul.f32 %v1490_v48, %v1470_v19 }
0x16f2   :  { %1494 = vrot.lane.b32.xlu1 %v1492_v26, %s2141_s3 }
0x1764   :  { %v1495_v43 = vpop.permute.xlu1 %1494 }
0x1765   :  { %1793 = vmatmul.msk.f32.vlgmr.msra.gmra.mxu1 %vm138_vm11, %v1495_v43 }
0x17e2   :  { %v1515_v27 = vpop.f32.mrf.mxu1 }
0x17e3   :  { %v1519_v28 = vrot.slane %v1515_v27, 6 }
0x17e5   :  { %v1521_v29 = vadd.f32 %v1519_v28, %v2492_v62 }
0x17e7   :  { %1981 = vtanh.f32 %v1521_v29  ;;  %v1794_v33 = vmul.f32 -1.442695, %v1521_v29 }
0x17e9   :  { %1983 = vpow2.f32 %v1794_v33 }
0x17ed   :  { %v1982_v20 = vpop.eup %1981 }
0x17ee   :  { %1547 = vrot.lane.b32.xlu2 %v1982_v20, %s2140_s15 }
0x17ef   :  { %v1984_v30 = vpop.eup %1983 }
0x17f0   :  { %v1525_v31 = vadd.f32 1.0, %v1984_v30 }
0x17f2   :  { %1985 = vrcp.f32 %v1525_v31  ;;  %v1537_v38 = vand.u32 2147483648, %v1525_v31  ;;  %vm1531_vm1 = vweird.f32 %v1525_v31  ;;  %v1535_v44 = vand.u32 2147483647, %v1525_v31 }
0x17f4   :  { %v1538_v46 = vor.u32 1.1754944e-38, %v1537_v38  ;;  %vm1536_vm3 = vcmp.eq.f32.partialorder %v1535_v44, 8.507059e+37 }
0x17f8   :  { %v1986_v32 = vpop.eup %1985 }
0x17f9   :  { %v1527_v34 = vmul.f32 %v1986_v32, %v1525_v31  ;;  %vm1532_vm0 = vweird.f32 %v1986_v32 }
0x17fa   :  { %vm1533_vm2 = vmor %vm1531_vm1, %vm1532_vm0 }
0x17fb   :  { %v1528_v36 = vsub.f32 1.0, %v1527_v34 }
0x17fd   :  { %v1529_v37 = vmul.f32 %v1986_v32, %v1528_v36 }
0x17ff   :  { %v1530_v14 = vadd.f32 %v1986_v32, %v1529_v37 }
0x1801   :  { %v1534_v45 = vsel %vm1533_vm2, %v1986_v32, %v1530_v14 }
0x1802   :  { %v1539_v11 = vsel %vm1536_vm3, %v1538_v46, %v1534_v45 }
0x1803   :  { %v1545_v47 = vmul.f32 %v1543_v8, %v1539_v11  ;;  %v1702_v8 = vld [vmem:[%s2543_s7] sm:$0xff] }
0x1848   :  { %v1548_v53 = vpop.permute.xlu2 %1547 }
0x1849   :  { %v1550_v35 = vmul.f32 %v1548_v53, %v1539_v11  ;;  %v1705_v53 = vld [vmem:[%s2543_s7 + $0x18] sm:$0xff] }
0x184a   :  { %1728 = vmatpush.msra.mxu0 %v1705_v53 }
0x184b   :  { %1552 = vrot.lane.b32.xlu0 %v1550_v35, %s2141_s3  ;;  %v1703_v35 = vld [vmem:[%s2543_s7 + $0x8] sm:$0xff] }
0x18bd   :  { %v1553_v50 = vpop.permute.xlu0 %1552 }
0x18be   :  { %v1555_v49 = vadd.f32 %v1553_v50, %v1545_v47 }
0x18c0   :  { %1987 = vtanh.f32 %v1555_v49  ;;  %v1613_v39 = vrot.slane %v1555_v49, 6 }
0x18c6   :  { %v1988_v3 = vpop.eup %1987 }
0x18c7   :  { %1558 = vrot.lane.b32.xlu1 %v1988_v3, %s2140_s15 }
0x1939   :  { %v1559_v57 = vpop.permute.xlu1 %1558 }
0x193a   :  { %v1561_v51 = vmul.f32 %v1559_v57, %v1539_v11  ;;  %v1704_v11 = vld [vmem:[%s2543_s7 + $0x10] sm:$0xff]  ;;  %v1812_v57 = vld [vmem:[%s2544_s8] ss:$0 sm:$0xff]  ;;  %s1745_s7 = sshll.u32 %s2545_s9, 4  ;;  %s1746_s7 = int_to_ptr.hbm [resolvable:$true] %s1745_s7 }
0x193b   :  { %1729 = vmatpush.msra.mxu0 %v1704_v11 }
0x193c   :  { %v1563_v55 = vrot.slane %v1561_v51, 2 }
0x193d   :  { %1730 = vmatpush.msra.mxu0 %v1703_v35 }
0x193e   :  { %1564 = vrot.lane.b32.xlu2 %v1563_v55, %s2141_s3 }
0x193f   :  { %1731 = vmatpush.msra.mxu0 %v1702_v8 }
0x1998   :  { %v1565_v42 = vpop.permute.xlu2 %1564 }
0x1999   :  { %1795 = vmatmul.msk.f32.vlgmr.msrb.gmra.mxu2 %vm138_vm11, %v1565_v42 }
0x1a1c   :  { %v1585_v59 = vpop.f32.mrf.mxu2 }
0x1a1d   :  { %v1589_v60 = vrot.slane %v1585_v59, 4 }
0x1a1f   :  { %v1591_v15 = vadd.f32 %v1589_v60, %v2492_v62 }
0x1a21   :  { %1989 = vtanh.f32 %v1591_v15  ;;  %v1796_v63 = vmul.f32 -1.442695, %v1591_v15 }
0x1a23   :  { %1991 = vpow2.f32 %v1796_v63 }
0x1a27   :  { %v1990_v16 = vpop.eup %1989 }
0x1a28   :  { %1617 = vrot.lane.b32.xlu0 %v1990_v16, %s2140_s15 }
0x1a29   :  { %v1992_v0 = vpop.eup %1991 }
0x1a2a   :  { %v1595_v1 = vadd.f32 1.0, %v1992_v0 }
0x1a2c   :  { %1993 = vrcp.f32 %v1595_v1  ;;  %v1607_v6 = vand.u32 2147483648, %v1595_v1  ;;  %vm1601_vm4 = vweird.f32 %v1595_v1  ;;  %v1605_v9 = vand.u32 2147483647, %v1595_v1 }
0x1a2e   :  { %v1608_v12 = vor.u32 1.1754944e-38, %v1607_v6  ;;  %vm1606_vm6 = vcmp.eq.f32.partialorder %v1605_v9, 8.507059e+37 }
0x1a32   :  { %v1994_v41 = vpop.eup %1993 }
0x1a33   :  { %v1597_v2 = vmul.f32 %v1994_v41, %v1595_v1  ;;  %vm1602_vm9 = vweird.f32 %v1994_v41 }
0x1a34   :  { %vm1603_vm5 = vmor %vm1601_vm4, %vm1602_vm9 }
0x1a35   :  { %v1598_v7 = vsub.f32 1.0, %v1597_v2 }
0x1a37   :  { %v1599_v61 = vmul.f32 %v1994_v41, %v1598_v7 }
0x1a39   :  { %v1600_v5 = vadd.f32 %v1994_v41, %v1599_v61 }
0x1a3b   :  { %v1604_v10 = vsel %vm1603_vm5, %v1994_v41, %v1600_v5 }
0x1a3c   :  { %v1609_v54 = vsel %vm1606_vm6, %v1608_v12, %v1604_v10 }
0x1a3d   :  { %v1615_v4 = vmul.f32 %v1613_v39, %v1609_v54 }
0x1a9a   :  { %v1618_v52 = vpop.permute.xlu0 %1617 }
0x1a9b   :  { %v1620_v56 = vmul.f32 %v1618_v52, %v1609_v54 }
0x1a9d   :  { %1622 = vrot.lane.b32.xlu1 %v1620_v56, %s2141_s3 }
0x1b0f   :  { %v1623_v58 = vpop.permute.xlu1 %1622 }
0x1b10   :  { %v1625_v13 = vadd.f32 %v1623_v58, %v1615_v4 }
0x1b12   :  { %1995 = vtanh.f32 %v1625_v13  ;;  %v1683_v14 = vrot.slane %v1625_v13, 6 }
0x1b18   :  { %v1996_v17 = vpop.eup %1995 }
0x1b19   :  { %1628 = vrot.lane.b32.xlu2 %v1996_v17, %s2140_s15 }
0x1b73   :  { %v1629_v18 = vpop.permute.xlu2 %1628 }
0x1b74   :  { %v1631_v19 = vmul.f32 %v1629_v18, %v1609_v54 }
0x1b76   :  { %v1633_v21 = vrot.slane %v1631_v19, 4 }
0x1b78   :  { %1634 = vrot.lane.b32.xlu0 %v1633_v21, %s2141_s3 }
0x1bea   :  { %v1635_v22 = vpop.permute.xlu0 %1634 }
0x1beb   :  { %1797 = vmatmul.msk.f32.vlgmr.msra.gmra.mxu3 %vm138_vm11, %v1635_v22 }
0x1c6e   :  { %v1655_v23 = vpop.f32.mrf.mxu3 }
0x1c6f   :  { %v1659_v40 = vrot.slane %v1655_v23, 2 }
0x1c71   :  { %v1661_v24 = vadd.f32 %v1659_v40, %v2492_v62 }
0x1c73   :  { %1997 = vtanh.f32 %v1661_v24  ;;  %v1798_v48 = vmul.f32 -1.442695, %v1661_v24 }
0x1c75   :  { %1999 = vpow2.f32 %v1798_v48 }
0x1c79   :  { %v1998_v25 = vpop.eup %1997 }
0x1c7a   :  { %1687 = vrot.lane.b32.xlu1 %v1998_v25, %s2140_s15 }
0x1c7b   :  { %v2000_v26 = vpop.eup %1999 }
0x1c7c   :  { %v1665_v43 = vadd.f32 1.0, %v2000_v26 }
0x1c7e   :  { %2001 = vrcp.f32 %v1665_v43  ;;  %v1677_v30 = vand.u32 2147483648, %v1665_v43  ;;  %vm1671_vm8 = vweird.f32 %v1665_v43  ;;  %v1675_v31 = vand.u32 2147483647, %v1665_v43 }
0x1c80   :  { %v1678_v32 = vor.u32 1.1754944e-38, %v1677_v30  ;;  %vm1676_vm12 = vcmp.eq.f32.partialorder %v1675_v31, 8.507059e+37 }
0x1c84   :  { %v2002_v27 = vpop.eup %2001 }
0x1c85   :  { %v1667_v28 = vmul.f32 %v2002_v27, %v1665_v43  ;;  %vm1672_vm7 = vweird.f32 %v2002_v27 }
0x1c86   :  { %vm1673_vm10 = vmor %vm1671_vm8, %vm1672_vm7 }
0x1c87   :  { %v1668_v29 = vsub.f32 1.0, %v1667_v28 }
0x1c89   :  { %v1669_v20 = vmul.f32 %v2002_v27, %v1668_v29 }
0x1c8b   :  { %v1670_v33 = vadd.f32 %v2002_v27, %v1669_v20 }
0x1c8d   :  { %v1674_v62 = vsel %vm1673_vm10, %v2002_v27, %v1670_v33 }
0x1c8e   :  { %v1679_v36 = vsel %vm1676_vm12, %v1678_v32, %v1674_v62 }
0x1c8f   :  { %v1685_v38 = vmul.f32 %v1683_v14, %v1679_v36 }
0x1cec   :  { %v1688_v34 = vpop.permute.xlu1 %1687 }
0x1ced   :  { %v1690_v37 = vmul.f32 %v1688_v34, %v1679_v36 }
0x1cef   :  { %1692 = vrot.lane.b32.xlu2 %v1690_v37, %s2141_s3 }
0x1d49   :  { %v1693_v44 = vpop.permute.xlu2 %1692 }
0x1d4a   :  { %v1695_v45 = vadd.f32 %v1693_v44, %v1685_v38 }
0x1d4c   :  { %2003 = vtanh.f32 %v1695_v45 }
0x1d52   :  { %v2004_v46 = vpop.eup %2003 }
0x1d53   :  { %1698 = vrot.lane.b32.xlu0 %v2004_v46, %s2140_s15 }
0x1dc5   :  { %v1699_v47 = vpop.permute.xlu0 %1698 }
0x1dc6   :  { %v1701_v50 = vmul.f32 %v1699_v47, %v1679_v36 }
0x1dc8   :  { %v1711_v49 = vrot.slane %v1701_v50, 6 }
0x1dca   :  { %1712 = vrot.lane.b32.xlu1 %v1711_v49, %s2141_s3 }
0x1e3c   :  { %v1713_v3 = vpop.permute.xlu1 %1712 }
0x1e3d   :  { %1799 = vmatmul.msk.f32.vlgmr.msra.gmra.mxu0 %vm138_vm11, %v1713_v3 }
0x1eba   :  { %v1733_v51 = vpop.f32.mrf.mxu0 }
0x1ebb   :  { %v1734_v55 = vadd.f32 %v1812_v57, %v1733_v51 }
0x1ebd   :  { %1737 = vst.msk [vmem:[#allocation11] sm:$0x3] %vm1736_vm13, %v1734_v55 }
0x1ebe   :  { %1748 = dma.vmem_to_hbm [thread:$0]  %s1744_s27, 32, %s1746_s7, [#allocation5]  }
0x1ebf   :  { %2131 = dma.done.wait [#allocation5], 32  }
0x1ec0   :  { %2132 = vsyncadd [#allocation5], 4294967264 }
0x1ec1   :  { %1753 = vsyncpa [#allocation4], 1 }
0x1ec2   :  { %1754 = vsyncpa [#allocation7], 1 }
0x1ec3   :  { %1755 = vsyncpa [#allocation10], 1 }
0x1ec4   :  { %1756 = vsyncpa [#allocation5], 1 }

</bundles_post_ra>
